<compile_context>
chip_gen: v5e
topology: v5e:2x2
jax: 0.10.0
libtpu: 0.0.40
codegen_flags: <defaults>
</compile_context>

<pallas_src>
import functools

import jax
import jax.numpy as jnp
from jax import lax
from jax.experimental import pallas as pl
from jax.experimental.pallas import tpu as pltpu

_LANE = 128


def _round_up(x, m):
    return ((x + m - 1) // m) * m


# ---------------------------------------------------------------------------
# Pallas kernel: fused (x_i * x_j) -> [Linear (+folded BN) -> ReLU]* -> Linear
# ---------------------------------------------------------------------------
def _link_predictor_kernel(n_layers, xi_ref, xj_ref, *refs):
    """refs = (w0, b0, w1, b1, ..., w_{L-1}, b_{L-1}, out_ref). BN pre-folded."""
    o_ref = refs[-1]
    mx_dtype = refs[0].dtype          # MXU input dtype (bf16 by default)

    # Edge feature: elementwise product of the two endpoint embeddings.
    # Computed in f32 on the VPU, then cast down to the MXU input dtype.
    h = (xi_ref[...].astype(jnp.float32) * xj_ref[...].astype(jnp.float32)
         ).astype(mx_dtype)

    for i in range(n_layers):
        w = refs[2 * i][...]          # (f_in, f_out)  -- BN folded, compute dtype
        b = refs[2 * i + 1][...]      # (1,  f_out)    -- BN folded, f32
        acc = jnp.dot(h, w, preferred_element_type=jnp.float32) + b
        if i < n_layers - 1:
            # BatchNorm already folded into (w, b); dropout is identity (eval).
            acc = jnp.maximum(acc, 0.0)
            h = acc.astype(mx_dtype)
        else:
            h = acc

    o_ref[...] = h.astype(o_ref.dtype)


# ---------------------------------------------------------------------------
# Tile-size selection (adaptive, VMEM-aware, megacore-friendly)
# ---------------------------------------------------------------------------
def _pick_tm(batch, pdims, x_bytes, out_bytes, requested, n_weight_buffers):
    if requested is not None:
        tm = max(_LANE, _round_up(int(requested), _LANE))
    else:
        rows = _round_up(max(batch, 1), _LANE)
        tm = min(rows, 1024)
        # Prefer >= 2 grid steps so v7x's two TensorCores both get work
        # (no-op on single-TC v5e/v6e).
        if rows >= 2 * _LANE:
            tm = min(tm, max(_LANE, (rows // 2) // _LANE * _LANE))

    # Clamp so the pipelined working set fits comfortably in scoped VMEM
    # (conservative budget, leaves headroom on v7x's 64 MiB physical VMEM).
    n_layers = len(pdims) - 1
    w_bytes = (n_weight_buffers
               * sum(pdims[i] * pdims[i + 1] for i in range(n_layers)) * x_bytes
               + sum(pdims[1:]) * 4)

    def estimate(t):
        io = 2 * (2 * t * pdims[0] * x_bytes) + 2 * t * pdims[-1] * out_bytes
        act = 2 * t * max(pdims) * 4          # f32 activations between layers
        return io + act + w_bytes

    budget = 20 * 1024 * 1024
    while tm > _LANE and estimate(tm) > budget:
        tm = max(_LANE, _round_up(tm // 2, _LANE))
    return tm


# ---------------------------------------------------------------------------
# Wrapper
# ---------------------------------------------------------------------------
def link_predictor_forward(x_i, x_j, weights, biases, *, tm=None,
                           compute_dtype=jnp.bfloat16, out_dtype=jnp.float32,
                           single_buffer_weights=True):
    """x_i, x_j: (B, in_feats). weights[i]: (f_in, f_out), biases[i]: (f_out,).

    Eval-mode BatchNorm must already be folded into the hidden-layer
    weights/biases in f32 (see fold_bn_into_linear); this wrapper then casts
    inputs/weights to `compute_dtype` (bf16 by default) for the MXU, while the
    kernel accumulates in f32.
    """
    assert x_i.shape == x_j.shape and x_i.ndim == 2
    B, f_in = x_i.shape
    n_layers = len(weights)
    assert n_layers >= 1 and len(biases) == n_layers
    f_out = int(weights[-1].shape[1])

    # ---- Pad every feature dim up to a lane multiple (128) so all tiles are
    # lane-dense (guards the production out_feats == 1 case against masked
    # partial stores).  Padding is zeros, so it does not change the math.
    dims = [f_in] + [int(w.shape[1]) for w in weights]
    pdims = [max(_LANE, _round_up(d, _LANE)) for d in dims]

    w_p, b_p = [], []
    for i, (w, b) in enumerate(zip(weights, biases)):
        fi, fo = int(w.shape[0]), int(w.shape[1])
        assert fi == dims[i] and fo == dims[i + 1]
        wp = jnp.zeros((pdims[i], pdims[i + 1]), jnp.float32)
        wp = wp.at[:fi, :fo].set(w.astype(jnp.float32))
        bp = jnp.zeros((pdims[i + 1],), jnp.float32).at[:fo].set(
            b.astype(jnp.float32))
        # BN was folded in f32 above this point; only now cast to bf16.
        w_p.append(wp.astype(compute_dtype))
        b_p.append(bp.reshape(1, -1))          # bias stays f32 (added post-acc)

    x_bytes = jnp.dtype(compute_dtype).itemsize
    out_bytes = jnp.dtype(out_dtype).itemsize
    tm = _pick_tm(B, pdims, x_bytes, out_bytes, tm,
                  n_weight_buffers=1 if single_buffer_weights else 2)

    rows_p = _round_up(max(B, 1), tm)

    def prep(x):
        x = x.astype(compute_dtype)
        return jnp.pad(x, ((0, rows_p - B), (0, pdims[0] - f_in)))

    args = [prep(x_i), prep(x_j)]
    for w, b in zip(w_p, b_p):
        args.append(w)
        args.append(b)

    kernel = functools.partial(_link_predictor_kernel, n_layers)
    grid = (rows_p // tm,)

    cost = pl.CostEstimate(
        flops=int(2 * rows_p * sum(pdims[i] * pdims[i + 1]
                                   for i in range(n_layers))
                  + rows_p * pdims[0]),
        transcendentals=0,
        bytes_accessed=int(2 * rows_p * pdims[0] * x_bytes
                           + sum(int(w.size) * x_bytes for w in w_p)
                           + sum(int(b.size) * 4 for b in b_p)
                           + rows_p * pdims[-1] * out_bytes),
    )

    row_spec = pl.BlockSpec((tm, pdims[0]), lambda m: (m, 0))
    out_spec = pl.BlockSpec((tm, pdims[-1]), lambda m: (m, 0))

    def invoke(weight_pipeline_mode):
        in_specs = [row_spec, row_spec]
        for w, b in zip(w_p, b_p):
            if weight_pipeline_mode is None:
                in_specs.append(pl.BlockSpec(w.shape, lambda m: (0, 0)))
                in_specs.append(pl.BlockSpec(b.shape, lambda m: (0, 0)))
            else:
                # Resident weights: block index never changes -> single buffer.
                in_specs.append(pl.BlockSpec(w.shape, lambda m: (0, 0),
                                             pipeline_mode=weight_pipeline_mode))
                in_specs.append(pl.BlockSpec(b.shape, lambda m: (0, 0),
                                             pipeline_mode=weight_pipeline_mode))
        return pl.pallas_call(
            kernel,
            grid=grid,
            in_specs=in_specs,
            out_specs=out_spec,
            out_shape=jax.ShapeDtypeStruct((rows_p, pdims[-1]), out_dtype),
            compiler_params=pltpu.CompilerParams(
                dimension_semantics=("parallel",)),
            cost_estimate=cost,
        )(*args)

    if single_buffer_weights:
        try:
            out = jax.block_until_ready(invoke(pl.Buffered(1)))
        except Exception:
            # Fallback for jax versions that reject pipeline_mode on a
            # top-level pallas_call input: default double-buffered weights
            # (identical results, slightly more VMEM).
            out = invoke(None)
    else:
        out = invoke(None)

    return out[:B, :f_out]


# ---------------------------------------------------------------------------
# Eval-mode BatchNorm1d folding (in f32):  BN(x @ W + b) == x @ W' + b'
# ---------------------------------------------------------------------------
def fold_bn_into_linear(w, b, gamma, beta, run_mean, run_var, eps=1e-5):
    scale = gamma / jnp.sqrt(run_var + eps)          # (f_out,)
    w_eff = w * scale[None, :]
    b_eff = (b - run_mean) * scale + beta
    return w_eff, b_eff


# ---------------------------------------------------------------------------
# Pure-JAX reference (for correctness validation)
# ---------------------------------------------------------------------------
def _reference(x_i, x_j, weights, biases):
    h = x_i * x_j
    for i, (w, b) in enumerate(zip(weights, biases)):
        h = jnp.dot(h, w, precision=lax.Precision.HIGHEST) + b[None, :]
        if i < len(weights) - 1:
            h = jnp.maximum(h, 0.0)
    return h


if __name__ == "__main__":
    def make_model(key, in_feats, n_hidden, out_feats, n_layers, bn, eps=1e-5):
        dims = [in_feats] + [n_hidden] * (n_layers - 1) + [out_feats]
        weights, biases = [], []
        for i in range(n_layers):
            f_i, f_o = dims[i], dims[i + 1]
            key, k1, k2, k3, k4, k5, k6 = jax.random.split(key, 7)
            bound = 1.0 / (f_i ** 0.5)               # PyTorch Linear default init
            w = jax.random.uniform(k1, (f_i, f_o), jnp.float32, -bound, bound)
            b = jax.random.uniform(k2, (f_o,), jnp.float32, -bound, bound)
            if bn and i < n_layers - 1:
                gamma = 1.0 + 0.1 * jax.random.normal(k3, (f_o,), jnp.float32)
                beta = 0.1 * jax.random.normal(k4, (f_o,), jnp.float32)
                mean = 0.1 * jax.random.normal(k5, (f_o,), jnp.float32)
                var = jnp.abs(1.0 + 0.1 * jax.random.normal(k6, (f_o,),
                                                            jnp.float32))
                # Fold eval-mode BatchNorm1d into the Linear (in f32).
                w, b = fold_bn_into_linear(w, b, gamma, beta, mean, var, eps)
            weights.append(w)
            biases.append(b)
        return weights, biases

    def run_case(case_id, B, in_feats, n_hidden, out_feats, n_layers, bn, tm):
        key = jax.random.fold_in(jax.random.PRNGKey(0), case_id)
        kx, kp = jax.random.split(key)
        kx_i, kx_j = jax.random.split(kx)
        x_i = jax.random.normal(kx_i, (B, in_feats), jnp.float32)
        x_j = jax.random.normal(kx_j, (B, in_feats), jnp.float32)
        weights, biases = make_model(kp, in_feats, n_hidden, out_feats,
                                     n_layers, bn)

        out = link_predictor_forward(x_i, x_j, weights, biases, tm=tm)
        out = jax.block_until_ready(out)
        assert out.shape == (B, out_feats), out.shape
        assert bool(jnp.all(jnp.isfinite(out)))

        # Reference with the same bf16 quantization of inputs/weights (kernel
        # accumulates in f32); only intermediate-activation rounding differs.
        q = lambda a: a.astype(jnp.bfloat16).astype(jnp.float32)
        ref = _reference(q(x_i), q(x_j), [q(w) for w in weights], biases)
        max_err = float(jnp.max(jnp.abs(out - ref)))
        assert jnp.allclose(out, ref, atol=8e-2, rtol=8e-2), max_err

    # Case 1: production-like shape -- out_feats=1 (link score) exercises the
    # lane-padding guard on the output; ragged batch, adaptive tile.
    run_case(case_id=0, B=200, in_feats=128, n_hidden=128, out_feats=1,
             n_layers=3, bn=True, tm=None)

    # Case 2: non-128-aligned feature dims, explicit small tile (multi-step
    # grid across the batch), no-BatchNorm path.
    run_case(case_id=1, B=384, in_feats=96, n_hidden=128, out_feats=64,
             n_layers=3, bn=False, tm=128)

    print("KERNEL_OK")
</pallas_src>

<mosaic_0001>
module attributes {stable_mosaic.version = 11 : i64} {
  func.func @_link_predictor_kernel(%arg0: i32, %arg1: memref<128x128xbf16, #tpu.memory_space<vmem>>, %arg2: memref<128x128xbf16, #tpu.memory_space<vmem>>, %arg3: memref<128x128xbf16, #tpu.memory_space<vmem>>, %arg4: memref<1x128xf32, #tpu.memory_space<vmem>>, %arg5: memref<128x128xbf16, #tpu.memory_space<vmem>>, %arg6: memref<1x128xf32, #tpu.memory_space<vmem>>, %arg7: memref<128x128xbf16, #tpu.memory_space<vmem>>, %arg8: memref<1x128xf32, #tpu.memory_space<vmem>>, %arg9: memref<128x128xf32, #tpu.memory_space<vmem>>) attributes {dimension_semantics = [#tpu.dimension_semantics<parallel>], iteration_bounds = array<i64: 2>, scalar_prefetch = 0 : i64, scratch_operands = 0 : i64, tpu.core_type = #tpu.core_type<tc>, window_params = [{transform_indices = @transform_0, window_bounds = array<i64: 128, 128>}, {transform_indices = @transform_1, window_bounds = array<i64: 128, 128>}, {pipeline_mode = #tpu.pipeline_mode<synchronous>, transform_indices = @transform_2, window_bounds = array<i64: 128, 128>}, {pipeline_mode = #tpu.pipeline_mode<synchronous>, transform_indices = @transform_3, window_bounds = array<i64: 1, 128>}, {pipeline_mode = #tpu.pipeline_mode<synchronous>, transform_indices = @transform_4, window_bounds = array<i64: 128, 128>}, {pipeline_mode = #tpu.pipeline_mode<synchronous>, transform_indices = @transform_5, window_bounds = array<i64: 1, 128>}, {pipeline_mode = #tpu.pipeline_mode<synchronous>, transform_indices = @transform_6, window_bounds = array<i64: 128, 128>}, {pipeline_mode = #tpu.pipeline_mode<synchronous>, transform_indices = @transform_7, window_bounds = array<i64: 1, 128>}, {transform_indices = @transform_8, window_bounds = array<i64: 128, 128>}]} {
    %c0 = arith.constant 0 : index
    %c0_0 = arith.constant 0 : index
    %0 = vector.load %arg1[%c0, %c0_0] : memref<128x128xbf16, #tpu.memory_space<vmem>>, vector<128x128xbf16>
    %1 = arith.extf %0 : vector<128x128xbf16> to vector<128x128xf32>
    %c0_1 = arith.constant 0 : index
    %c0_2 = arith.constant 0 : index
    %2 = vector.load %arg2[%c0_1, %c0_2] : memref<128x128xbf16, #tpu.memory_space<vmem>>, vector<128x128xbf16>
    %3 = arith.extf %2 : vector<128x128xbf16> to vector<128x128xf32>
    %4 = arith.mulf %1, %3 : vector<128x128xf32>
    %5 = arith.truncf %4 : vector<128x128xf32> to vector<128x128xbf16>
    %c0_3 = arith.constant 0 : index
    %c0_4 = arith.constant 0 : index
    %6 = vector.load %arg3[%c0_3, %c0_4] : memref<128x128xbf16, #tpu.memory_space<vmem>>, vector<128x128xbf16>
    %c0_5 = arith.constant 0 : index
    %c0_6 = arith.constant 0 : index
    %7 = vector.load %arg4[%c0_5, %c0_6] : memref<1x128xf32, #tpu.memory_space<vmem>>, vector<1x128xf32>
    %cst = arith.constant dense<0.000000e+00> : vector<128x128xf32>
    %8 = tpu.matmul %5, %6, %cst {dimension_numbers = #tpu.dot_dimension_numbers<[1], [0], [0], [1], [0, 0, 1, 1], [], []>} : vector<128x128xbf16>, vector<128x128xbf16>, vector<128x128xf32> -> vector<128x128xf32>
    %9 = vector.broadcast %7 : vector<1x128xf32> to vector<128x128xf32>
    %10 = arith.addf %8, %9 : vector<128x128xf32>
    %cst_7 = arith.constant 0.000000e+00 : f32
    %11 = vector.broadcast %cst_7 : f32 to vector<128x128xf32>
    %12 = arith.maximumf %10, %11 : vector<128x128xf32>
    %13 = arith.truncf %12 : vector<128x128xf32> to vector<128x128xbf16>
    %c0_8 = arith.constant 0 : index
    %c0_9 = arith.constant 0 : index
    %14 = vector.load %arg5[%c0_8, %c0_9] : memref<128x128xbf16, #tpu.memory_space<vmem>>, vector<128x128xbf16>
    %c0_10 = arith.constant 0 : index
    %c0_11 = arith.constant 0 : index
    %15 = vector.load %arg6[%c0_10, %c0_11] : memref<1x128xf32, #tpu.memory_space<vmem>>, vector<1x128xf32>
    %cst_12 = arith.constant dense<0.000000e+00> : vector<128x128xf32>
    %16 = tpu.matmul %13, %14, %cst_12 {dimension_numbers = #tpu.dot_dimension_numbers<[1], [0], [0], [1], [0, 0, 1, 1], [], []>} : vector<128x128xbf16>, vector<128x128xbf16>, vector<128x128xf32> -> vector<128x128xf32>
    %17 = vector.broadcast %15 : vector<1x128xf32> to vector<128x128xf32>
    %18 = arith.addf %16, %17 : vector<128x128xf32>
    %cst_13 = arith.constant 0.000000e+00 : f32
    %19 = vector.broadcast %cst_13 : f32 to vector<128x128xf32>
    %20 = arith.maximumf %18, %19 : vector<128x128xf32>
    %21 = arith.truncf %20 : vector<128x128xf32> to vector<128x128xbf16>
    %c0_14 = arith.constant 0 : index
    %c0_15 = arith.constant 0 : index
    %22 = vector.load %arg7[%c0_14, %c0_15] : memref<128x128xbf16, #tpu.memory_space<vmem>>, vector<128x128xbf16>
    %c0_16 = arith.constant 0 : index
    %c0_17 = arith.constant 0 : index
    %23 = vector.load %arg8[%c0_16, %c0_17] : memref<1x128xf32, #tpu.memory_space<vmem>>, vector<1x128xf32>
    %cst_18 = arith.constant dense<0.000000e+00> : vector<128x128xf32>
    %24 = tpu.matmul %21, %22, %cst_18 {dimension_numbers = #tpu.dot_dimension_numbers<[1], [0], [0], [1], [0, 0, 1, 1], [], []>} : vector<128x128xbf16>, vector<128x128xbf16>, vector<128x128xf32> -> vector<128x128xf32>
    %25 = vector.broadcast %23 : vector<1x128xf32> to vector<128x128xf32>
    %26 = arith.addf %24, %25 : vector<128x128xf32>
    %c0_19 = arith.constant 0 : index
    %c0_20 = arith.constant 0 : index
    %27 = vector.load %arg9[%c0_19, %c0_20] : memref<128x128xf32, #tpu.memory_space<vmem>>, vector<128x128xf32>
    tpu.vector_store %arg9[%c0_19, %c0_20], %26 {strides = array<i32>} : memref<128x128xf32, #tpu.memory_space<vmem>>, vector<128x128xf32>,
    return
  }
  func.func @transform_0(%arg0: i32) -> (i32, i32) {
    %c0_i32 = arith.constant 0 : i32
    %c0_i32_0 = arith.constant 0 : i32
    return %arg0, %c0_i32 : i32, i32
  }
  func.func @transform_1(%arg0: i32) -> (i32, i32) {
    %c0_i32 = arith.constant 0 : i32
    %c0_i32_0 = arith.constant 0 : i32
    return %arg0, %c0_i32 : i32, i32
  }
  func.func @transform_2(%arg0: i32) -> (i32, i32) {
    %c0_i32 = arith.constant 0 : i32
    %c0_i32_0 = arith.constant 0 : i32
    %c0_i32_1 = arith.constant 0 : i32
    return %c0_i32, %c0_i32_0 : i32, i32
  }
  func.func @transform_3(%arg0: i32) -> (i32, i32) {
    %c0_i32 = arith.constant 0 : i32
    %c0_i32_0 = arith.constant 0 : i32
    %c0_i32_1 = arith.constant 0 : i32
    return %c0_i32, %c0_i32_0 : i32, i32
  }
  func.func @transform_4(%arg0: i32) -> (i32, i32) {
    %c0_i32 = arith.constant 0 : i32
    %c0_i32_0 = arith.constant 0 : i32
    %c0_i32_1 = arith.constant 0 : i32
    return %c0_i32, %c0_i32_0 : i32, i32
  }
  func.func @transform_5(%arg0: i32) -> (i32, i32) {
    %c0_i32 = arith.constant 0 : i32
    %c0_i32_0 = arith.constant 0 : i32
    %c0_i32_1 = arith.constant 0 : i32
    return %c0_i32, %c0_i32_0 : i32, i32
  }
  func.func @transform_6(%arg0: i32) -> (i32, i32) {
    %c0_i32 = arith.constant 0 : i32
    %c0_i32_0 = arith.constant 0 : i32
    %c0_i32_1 = arith.constant 0 : i32
    return %c0_i32, %c0_i32_0 : i32, i32
  }
  func.func @transform_7(%arg0: i32) -> (i32, i32) {
    %c0_i32 = arith.constant 0 : i32
    %c0_i32_0 = arith.constant 0 : i32
    %c0_i32_1 = arith.constant 0 : i32
    return %c0_i32, %c0_i32_0 : i32, i32
  }
  func.func @transform_8(%arg0: i32) -> (i32, i32) {
    %c0_i32 = arith.constant 0 : i32
    %c0_i32_0 = arith.constant 0 : i32
    return %arg0, %c0_i32 : i32, i32
  }
}

module attributes {stable_mosaic.version = 11 : i64} {
  func.func @_link_predictor_kernel(%arg0: i32, %arg1: memref<128x128xbf16, #tpu.memory_space<vmem>>, %arg2: memref<128x128xbf16, #tpu.memory_space<vmem>>, %arg3: memref<128x128xbf16, #tpu.memory_space<vmem>>, %arg4: memref<1x128xf32, #tpu.memory_space<vmem>>, %arg5: memref<128x128xbf16, #tpu.memory_space<vmem>>, %arg6: memref<1x128xf32, #tpu.memory_space<vmem>>, %arg7: memref<128x128xbf16, #tpu.memory_space<vmem>>, %arg8: memref<1x128xf32, #tpu.memory_space<vmem>>, %arg9: memref<128x128xf32, #tpu.memory_space<vmem>>) attributes {dimension_semantics = [#tpu.dimension_semantics<parallel>], iteration_bounds = array<i64: 2>, scalar_prefetch = 0 : i64, scratch_operands = 0 : i64, tpu.core_type = #tpu.core_type<tc>, window_params = [{transform_indices = @transform_0, window_bounds = array<i64: 128, 128>}, {transform_indices = @transform_1, window_bounds = array<i64: 128, 128>}, {pipeline_mode = #tpu.pipeline_mode<synchronous>, transform_indices = @transform_2, window_bounds = array<i64: 128, 128>}, {pipeline_mode = #tpu.pipeline_mode<synchronous>, transform_indices = @transform_3, window_bounds = array<i64: 1, 128>}, {pipeline_mode = #tpu.pipeline_mode<synchronous>, transform_indices = @transform_4, window_bounds = array<i64: 128, 128>}, {pipeline_mode = #tpu.pipeline_mode<synchronous>, transform_indices = @transform_5, window_bounds = array<i64: 1, 128>}, {pipeline_mode = #tpu.pipeline_mode<synchronous>, transform_indices = @transform_6, window_bounds = array<i64: 128, 128>}, {pipeline_mode = #tpu.pipeline_mode<synchronous>, transform_indices = @transform_7, window_bounds = array<i64: 1, 128>}, {transform_indices = @transform_8, window_bounds = array<i64: 128, 128>}]} {
    %c0 = arith.constant 0 : index
    %c0_0 = arith.constant 0 : index
    %0 = vector.load %arg1[%c0, %c0_0] : memref<128x128xbf16, #tpu.memory_space<vmem>>, vector<128x128xbf16>
    %1 = arith.extf %0 : vector<128x128xbf16> to vector<128x128xf32>
    %c0_1 = arith.constant 0 : index
    %c0_2 = arith.constant 0 : index
    %2 = vector.load %arg2[%c0_1, %c0_2] : memref<128x128xbf16, #tpu.memory_space<vmem>>, vector<128x128xbf16>
    %3 = arith.extf %2 : vector<128x128xbf16> to vector<128x128xf32>
    %4 = arith.mulf %1, %3 : vector<128x128xf32>
    %5 = arith.truncf %4 : vector<128x128xf32> to vector<128x128xbf16>
    %c0_3 = arith.constant 0 : index
    %c0_4 = arith.constant 0 : index
    %6 = vector.load %arg3[%c0_3, %c0_4] : memref<128x128xbf16, #tpu.memory_space<vmem>>, vector<128x128xbf16>
    %c0_5 = arith.constant 0 : index
    %c0_6 = arith.constant 0 : index
    %7 = vector.load %arg4[%c0_5, %c0_6] : memref<1x128xf32, #tpu.memory_space<vmem>>, vector<1x128xf32>
    %cst = arith.constant dense<0.000000e+00> : vector<128x128xf32>
    %8 = tpu.matmul %5, %6, %cst {dimension_numbers = #tpu.dot_dimension_numbers<[1], [0], [0], [1], [0, 0, 1, 1], [], []>} : vector<128x128xbf16>, vector<128x128xbf16>, vector<128x128xf32> -> vector<128x128xf32>
    %9 = vector.broadcast %7 : vector<1x128xf32> to vector<128x128xf32>
    %10 = arith.addf %8, %9 : vector<128x128xf32>
    %cst_7 = arith.constant 0.000000e+00 : f32
    %11 = vector.broadcast %cst_7 : f32 to vector<128x128xf32>
    %12 = arith.maximumf %10, %11 : vector<128x128xf32>
    %13 = arith.truncf %12 : vector<128x128xf32> to vector<128x128xbf16>
    %c0_8 = arith.constant 0 : index
    %c0_9 = arith.constant 0 : index
    %14 = vector.load %arg5[%c0_8, %c0_9] : memref<128x128xbf16, #tpu.memory_space<vmem>>, vector<128x128xbf16>
    %c0_10 = arith.constant 0 : index
    %c0_11 = arith.constant 0 : index
    %15 = vector.load %arg6[%c0_10, %c0_11] : memref<1x128xf32, #tpu.memory_space<vmem>>, vector<1x128xf32>
    %cst_12 = arith.constant dense<0.000000e+00> : vector<128x128xf32>
    %16 = tpu.matmul %13, %14, %cst_12 {dimension_numbers = #tpu.dot_dimension_numbers<[1], [0], [0], [1], [0, 0, 1, 1], [], []>} : vector<128x128xbf16>, vector<128x128xbf16>, vector<128x128xf32> -> vector<128x128xf32>
    %17 = vector.broadcast %15 : vector<1x128xf32> to vector<128x128xf32>
    %18 = arith.addf %16, %17 : vector<128x128xf32>
    %cst_13 = arith.constant 0.000000e+00 : f32
    %19 = vector.broadcast %cst_13 : f32 to vector<128x128xf32>
    %20 = arith.maximumf %18, %19 : vector<128x128xf32>
    %21 = arith.truncf %20 : vector<128x128xf32> to vector<128x128xbf16>
    %c0_14 = arith.constant 0 : index
    %c0_15 = arith.constant 0 : index
    %22 = vector.load %arg7[%c0_14, %c0_15] : memref<128x128xbf16, #tpu.memory_space<vmem>>, vector<128x128xbf16>
    %c0_16 = arith.constant 0 : index
    %c0_17 = arith.constant 0 : index
    %23 = vector.load %arg8[%c0_16, %c0_17] : memref<1x128xf32, #tpu.memory_space<vmem>>, vector<1x128xf32>
    %cst_18 = arith.constant dense<0.000000e+00> : vector<128x128xf32>
    %24 = tpu.matmul %21, %22, %cst_18 {dimension_numbers = #tpu.dot_dimension_numbers<[1], [0], [0], [1], [0, 0, 1, 1], [], []>} : vector<128x128xbf16>, vector<128x128xbf16>, vector<128x128xf32> -> vector<128x128xf32>
    %25 = vector.broadcast %23 : vector<1x128xf32> to vector<128x128xf32>
    %26 = arith.addf %24, %25 : vector<128x128xf32>
    %c0_19 = arith.constant 0 : index
    %c0_20 = arith.constant 0 : index
    %27 = vector.load %arg9[%c0_19, %c0_20] : memref<128x128xf32, #tpu.memory_space<vmem>>, vector<128x128xf32>
    tpu.vector_store %arg9[%c0_19, %c0_20], %26 {strides = array<i32>} : memref<128x128xf32, #tpu.memory_space<vmem>>, vector<128x128xf32>,
    return
  }
  func.func @transform_0(%arg0: i32) -> (i32, i32) {
    %c0_i32 = arith.constant 0 : i32
    %c0_i32_0 = arith.constant 0 : i32
    return %arg0, %c0_i32 : i32, i32
  }
  func.func @transform_1(%arg0: i32) -> (i32, i32) {
    %c0_i32 = arith.constant 0 : i32
    %c0_i32_0 = arith.constant 0 : i32
    return %arg0, %c0_i32 : i32, i32
  }
  func.func @transform_2(%arg0: i32) -> (i32, i32) {
    %c0_i32 = arith.constant 0 : i32
    %c0_i32_0 = arith.constant 0 : i32
    %c0_i32_1 = arith.constant 0 : i32
    return %c0_i32, %c0_i32_0 : i32, i32
  }
  func.func @transform_3(%arg0: i32) -> (i32, i32) {
    %c0_i32 = arith.constant 0 : i32
    %c0_i32_0 = arith.constant 0 : i32
    %c0_i32_1 = arith.constant 0 : i32
    return %c0_i32, %c0_i32_0 : i32, i32
  }
  func.func @transform_4(%arg0: i32) -> (i32, i32) {
    %c0_i32 = arith.constant 0 : i32
    %c0_i32_0 = arith.constant 0 : i32
    %c0_i32_1 = arith.constant 0 : i32
    return %c0_i32, %c0_i32_0 : i32, i32
  }
  func.func @transform_5(%arg0: i32) -> (i32, i32) {
    %c0_i32 = arith.constant 0 : i32
    %c0_i32_0 = arith.constant 0 : i32
    %c0_i32_1 = arith.constant 0 : i32
    return %c0_i32, %c0_i32_0 : i32, i32
  }
  func.func @transform_6(%arg0: i32) -> (i32, i32) {
    %c0_i32 = arith.constant 0 : i32
    %c0_i32_0 = arith.constant 0 : i32
    %c0_i32_1 = arith.constant 0 : i32
    return %c0_i32, %c0_i32_0 : i32, i32
  }
  func.func @transform_7(%arg0: i32) -> (i32, i32) {
    %c0_i32 = arith.constant 0 : i32
    %c0_i32_0 = arith.constant 0 : i32
    %c0_i32_1 = arith.constant 0 : i32
    return %c0_i32, %c0_i32_0 : i32, i32
  }
  func.func @transform_8(%arg0: i32) -> (i32, i32) {
    %c0_i32 = arith.constant 0 : i32
    %c0_i32_0 = arith.constant 0 : i32
    return %arg0, %c0_i32 : i32, i32
  }
}

</mosaic_0001>

<bundles_post_ra>
// kernel: tpu_custom_call.1
= control target key start
LH: loop header
LB: loop body
LE: loop exit
PB: predicated region body
PF: predicated region fallthrough
CT: control target
= control target key end

     0   :  { %s1951_s0 = inlined_call_operand.hbm [shape: bf16[256,128], index: 0, kind: input, shape index: {}]   ;;  %s1952_s1 = inlined_call_operand.hbm [shape: bf16[256,128], index: 1, kind: input, shape index: {}]   ;;  %s1953_s2 = inlined_call_operand.hbm [shape: bf16[128,128], index: 2, kind: input, shape index: {}]   ;;  %s1954_s3 = inlined_call_operand.vmem [shape: f32[1,128], index: 3, kind: input, shape index: {}]   ;;  %s1955_s4 = inlined_call_operand.hbm [shape: bf16[128,128], index: 4, kind: input, shape index: {}]   ;;  %s1956_s5 = inlined_call_operand.vmem [shape: f32[1,128], index: 5, kind: input, shape index: {}]   ;;  %s1957_s6 = inlined_call_operand.hbm [shape: bf16[128,128], index: 6, kind: input, shape index: {}]   ;;  %s1958_s7 = inlined_call_operand.vmem [shape: f32[1,128], index: 7, kind: input, shape index: {}]   ;;  %s1959_s8 = inlined_call_operand.hbm [shape: f32[256,128], index: 8, kind: output, shape index: {}]  }
   0x1   :  { %1965 = sst [smem:[#allocation19_spill]] %s1951_s0 }
   0x2   :  { %1966 = sst [smem:[#allocation20_spill]] %s1953_s2 }
   0x3   :  { %1967 = sst [smem:[#allocation21_spill]] %s1955_s4 }
   0x4   :  { %1968 = sst [smem:[#allocation22_spill]] %s1957_s6 }
   0x5   :  { %13 = vsyncpa [#allocation3], 0 }
   0x6   :  { %15 = vsyncpa [#allocation3 + $0x1], 0 }
   0x7   :  { %16 = vsyncpa [#allocation6], 0 }
   0x8   :  { %18 = vsyncpa [#allocation6 + $0x1], 0 }
   0x9   :  { %19 = vsyncpa [#allocation9], 0 }
   0xa   :  { %20 = vsyncpa [#allocation4], 0 }
   0xb   :  { %22 = vsyncpa [#allocation4 + $0x1], 0  ;;  %s1683_s27 = smov 0   ;;  %s1685_s28 = smov 0  }
   0xc   :  { %s1687_s29 = smov 0   ;;  %s1689_s30 = smov 0  }
   0xd LB: > { %1969 = sst [smem:[#allocation17_spill]] %s1625_s29  ;;  %s1704_s9 = sadd.s32 4294967295, %s1629_s30   ;;  %s1629_s30 = sphi %s1689_s30, %s1988_s30   ;;  %s1625_s29 = sphi %s1687_s29, %s1985_s29   ;;  %s1621_s28 = sphi %s1685_s28, %s1987_s28   ;;  %s1617_s27 = sphi %s1683_s27, %s1986_s27  }
   0xe   : > { %s1063_s10 = sadd.s32 4294967294, %s1629_s30   ;;  %p48_p0 = scmp.ne.s32.totalorder %s1621_s28, %s1617_s27 }
   0xf   : > { %p49_p1 = scmp.eq.s32.totalorder %s1704_s9, 0  ;;  %p224_p2 = scmp.eq.s32.totalorder %s1704_s9, 1 }
  0x10   : > { %p230_p3 = scmp.eq.s32.totalorder %s1063_s10, 1  ;;  %p1064_p5 = scmp.ge.s32.totalorder %s1629_s30, 1 }
  0x11   : > { %p1713_p4 = por %p49_p1, %p48_p0  ;;  %p237_p7 = scmp.lt.s32.totalorder %s1629_s30, 3 }
  0x12   : > { %p1718_p6 = por %p230_p3, %p48_p0  ;;  %s1972_s2 = sld [smem:[#allocation20_spill]] }
  0x13   : > { %p1726_p8 = pnand %p1064_p5, %p237_p7  ;;  %s1631_s17 = smov [#allocation7]  }
  0x14   : > { %s250_s18 = sshll.u32 %s1631_s17, 4  ;;  %s1975_s4 = sld [smem:[#allocation21_spill]]  ;;  %s251_s18 = int_to_ptr.vmem [resolvable:$true] %s250_s18 }
  0x15   : > { %p1330_p9 = pneg %p1726_p8  ;;  %s1960_s23 = smov 64  }
  0x16   : > { %s1962_s24 = smov 4   ;;  %s1634_s25 = smov [#allocation8]  }
  0x17   : > { %p1734_p10 = pnand %p1330_p9, %p49_p1  ;;  %s267_s26 = sshll.u32 %s1634_s25, 4  ;;  %s268_s26 = int_to_ptr.vmem [resolvable:$true] %s267_s26 }
  0x18   : > { %s248_s15 = sshll.u32 %s1972_s2, 4  ;;  %s1976_s6 = sld [smem:[#allocation22_spill]]  ;;  %s249_s15 = int_to_ptr.hbm [resolvable:$true] %s248_s15 }
  0x19   : > { %1333 = dma.hbm_to_vmem [thread:$0]  (!%p1734_p10), %s249_s15, 1024, %s251_s18, [#allocation6], %s1960_s23, %s1960_s23, %s1962_s24  }
  0x1a   : > { %s265_s22 = sshll.u32 %s1975_s4, 4  ;;  %s1635_s15 = smov [#allocation10]   ;;  %s266_s22 = int_to_ptr.hbm [resolvable:$true] %s265_s22 }
  0x1b   : > { %1336 = dma.hbm_to_vmem [thread:$0]  (!%p1734_p10), %s266_s22, 1024, %s268_s26, [#allocation9], %s1960_s23, %s1960_s23, %s1962_s24  }
  0x1c   : > { %s284_s17 = sshll.u32 %s1635_s15, 4  ;;  %s1756_s18 = sadd.s32 1, %s1629_s30   ;;  %s285_s17 = int_to_ptr.vmem [resolvable:$true] %s284_s17 }
  0x1d   : > { %s32_s20 = ssub.s32 %s1629_s30, %s1756_s18  ;;  %s35_s21 = sadd.s32 1, %s1625_s29 }
  0x1e   : > { %s282_s14 = sshll.u32 %s1976_s6, 4  ;;  %p33_p12 = scmp.eq.s32.totalorder %s32_s20, 0  ;;  %s283_s14 = int_to_ptr.hbm [resolvable:$true] %s282_s14 }
  0x1f   : > { %1339 = dma.hbm_to_vmem [thread:$0]  (!%p1734_p10), %s283_s14, 1024, %s285_s17, [#allocation9], %s1960_s23, %s1960_s23, %s1962_s24  }
  0x20   : > { %p42_p13 = scmp.ne.s32.totalorder %s1625_s29, %s1621_s28  ;;  %p43_p0 = scmp.eq.s32.totalorder %s1629_s30, 0 }
  0x21   : > { %p1354_p3 = scmp.lt.s32.totalorder %s1629_s30, 2  ;;  %s301_s19 = sand.u32 1, %s1625_s29  }
  0x22   : > { %s1771_s22 = scalar_select %p33_p12, %s1625_s29, %s35_s21  }
  0x23   : > { %p44_p5 = por %p43_p0, %p42_p13  ;;  %p1775_p7 = por %p224_p2, %p42_p13 }
  0x24   : > { %1977 = sst [smem:[#allocation18_spill]] %s1771_s22  ;;  %s1183_s26 = sshll.u32 %s1629_s30, 6 }
  0x25   : > { %s1069_s10 = sshll.u32 %s301_s19, 6  ;;  %s1979_s0 = sld [smem:[#allocation19_spill]] }
  0x26   : > { %s305_s20 = scalar_lea.vmem [#allocation2], %s1069_s10  ;;  %p1786_p9 = pnand %p1354_p3, %p44_p5 }
  0x27   : > { %s313_s23 = sshll.u32 %s305_s20, 4  ;;  %s332_s4 = scalar_lea.hbm %s1952_s1, %s1183_s26  ;;  %s314_s23 = int_to_ptr.vmem [resolvable:$true] %s313_s23 }
  0x28   : > { %s327_s6 = scalar_lea.vmem [#allocation5], %s1069_s10  ;;  %s333_s13 = sshll.u32 %s332_s4, 4  ;;  %s334_s13 = int_to_ptr.hbm [resolvable:$true] %s333_s13 }
  0x29   : > { %s1793_s22 = sshll.u32 %s327_s6, 4  ;;  %s302_s14 = scalar_lea.sflag [#allocation3], %s301_s19  ;;  %s336_s22 = int_to_ptr.vmem [resolvable:$true] %s1793_s22 }
  0x2a   : > { %p1495_p10 = pneg %p1786_p9 }
  0x2b   : > { %s310_s15 = scalar_lea.hbm %s1979_s0, %s1183_s26  ;;  %s1498_s24 = scalar_lea.hbm %s1979_s0, 128 }
  0x2c   : > { %s311_s17 = sshll.u32 %s310_s15, 4  ;;  %s312_s17 = int_to_ptr.hbm [resolvable:$true] %s311_s17 }
  0x2d   : > { %s1491_s15 = sshra.s32 %s312_s17, 4  ;;  %s1492_s15 = int_to_ptr.hbm [resolvable:$true] %s1491_s15 }
  0x2e   : > { %s1493_s20 = scalar_lea.hbm %s1492_s15, 64  ;;  %p1499_p0 = scmp.lt.s32.totalorder %s1492_s15, %s1979_s0 }
  0x2f   : > { %p1494_p2 = scmp.ne.s32.totalorder %s1492_s15, %s1493_s20  ;;  %p1500_p3 = scmp.lt.s32.totalorder %s1498_s24, %s1493_s20 }
  0x31   : > { %p1496_p12 = pnand %p1495_p10, %p1494_p2  ;;  %p1501_p5 = por %p1500_p3, %p1499_p0 }
  0x33   : > { %p1497_p13 = pneg %p1496_p12 }
  0x35   : > { %p1502_p11 = pnand %p1501_p5, %p1497_p13 }
  0x37   : > { %1505 = shalt.err (!%p1502_p11)
}
  0x38   : > { %s1981_s4 = smov 4   ;;  %s1982_s6 = smov 64  }
  0x39   : > { %1343 = dma.hbm_to_vmem [thread:$0]  (!%p1786_p9), %s312_s17, 1024, %s314_s23, %s302_s14, %s1982_s6, %s1982_s6, %s1981_s4  }
  0x3a   : > { %s323_s29 = sand.u32 1, %s1629_s30   ;;  %s1521_s2 = sshra.s32 %s334_s13, 4  ;;  %s1522_s2 = int_to_ptr.hbm [resolvable:$true] %s1521_s2 }
  0x3b   : > { %s324_s19 = scalar_lea.sflag [#allocation6], %s323_s29  ;;  %s1523_s15 = scalar_lea.hbm %s1522_s2, 64 }
  0x3c   : > { %p1524_p2 = scmp.ne.s32.totalorder %s1522_s2, %s1523_s15  ;;  %s1528_s26 = scalar_lea.hbm %s1952_s1, 128 }
  0x3d   : > { %p1529_p13 = scmp.lt.s32.totalorder %s1522_s2, %s1952_s1  ;;  %p1530_p0 = scmp.lt.s32.totalorder %s1528_s26, %s1523_s15 }
  0x3e   : > { %p1526_p11 = pnand %p1524_p2, %p1495_p10 }
  0x3f   : > { %p1531_p3 = por %p1530_p0, %p1529_p13 }
  0x40   : > { %p1527_p12 = pneg %p1526_p11 }
  0x42   : > { %p1532_p5 = pnand %p1531_p3, %p1527_p12 }
  0x44   : > { %1535 = shalt.err (!%p1532_p5)
}
  0x45   : > { %1346 = dma.hbm_to_vmem [thread:$0]  (!%p1786_p9), %s334_s13, 1024, %s336_s22, %s324_s19, %s1982_s6, %s1982_s6, %s1981_s4  }
  0x46   : > { %347 = sbr.rel (%p1726_p8) target bundleno = 621 (0x26d), region = 52  ;;  %s1830_s23 = sand.u32 (!%p1726_p8), 1, %s1621_s28  }
  0x47   : > { %s1076_s0 = sshll.u32 (!%p1726_p8), %s1830_s23, 6  ;;  %s350_s17 = scalar_lea.sflag (!%p1726_p8), [#allocation3], %s1830_s23 }
  0x48   : > { %s1834_s14 = scalar_lea.vmem (!%p1726_p8), [#allocation2], %s1076_s0 }
  0x4b   : > { %1596 = dma.done.wait (%p1713_p4), %s350_s17, 1024  }
  0x4c   : > { %1598 = vsyncadd (%p1713_p4), %s350_s17, 4294966272  ;;  %s359_s22 = sand.u32 1, %s1704_s9   ;;  %s1841_s21 = scalar_lea.vmem [#allocation5], %s1076_s0 }
  0x4d   : > { %s360_s16 = scalar_lea.sflag [#allocation6], %s359_s22 }
  0x4e   : > { %1600 = dma.done.wait (%p1713_p4), %s360_s16, 1024  }
  0x4f   : > { %1602 = vsyncadd (%p1713_p4), %s360_s16, 4294966272 }
  0x50   : > { %1604 = dma.done.wait (%p49_p1), [#allocation6], 1024  }
  0x51   : > { %1606 = vsyncadd (%p49_p1), [#allocation6], 4294966272 }
  0x52   : > { %1608 = dma.done.wait (%p49_p1), [#allocation9], 2048  }
  0x53   : > { %1610 = vsyncadd (%p49_p1), [#allocation9], 4294965248  ;;  %v1192_v0 = vld [vmem:[#allocation7 + $0x38] sm:$0xff]  ;;  %v1191_v1 = vld [vmem:[#allocation7 + $0x30] sm:$0xff]  ;;  %s1081_s29 = sshll.u32 %s1830_s23, 7  ;;  %s1209_s20 = sshll.u32 %s1704_s9, 7 }
  0x54   : > { %576 = vmatpush.bf16.msra.mxu0 %v1192_v0  ;;  %1288 = vmatpush.bf16.msra.mxu3 %v1192_v0  ;;  %v1190_v2 = vld [vmem:[#allocation7 + $0x28] sm:$0xff]  ;;  %v1189_v3 = vld [vmem:[#allocation7 + $0x20] sm:$0xff]  ;;  %v1188_v4 = vld [vmem:[#allocation7 + $0x18] sm:$0xff]  ;;  %s1899_s15 = scalar_lea.vmem [#allocation11], %s1081_s29  ;;  %s935_s10 = scalar_lea.hbm %s1959_s8, %s1209_s20 }
  0x55   : > { %v1211_v5 = vld [vmem:[%s1834_s14] sm:$0xff]   ;;  %v1187_v7 = vld [vmem:[#allocation7 + $0x10] sm:$0xff]  ;;  %v1186_v18 = vld [vmem:[#allocation7 + $0x8] sm:$0xff]  ;;  %s936_s0 = sshll.u32 %s1899_s15, 4  ;;  %s938_s17 = sshll.u32 %s935_s10, 4  ;;  %s937_s0 = int_to_ptr.vmem [resolvable:$true] %s936_s0  ;;  %s939_s17 = int_to_ptr.hbm [resolvable:$true] %s938_s17 }
  0x56   : > { %v1243_v6 = vld [vmem:[%s1841_s21] sm:$0xff]   ;;  %v1279_v8 = vld [vmem:[%s1834_s14 + $0x30] sm:$0xff]   ;;  %v1212_v10 = vunpack.c.l.bf16 %v1211_v5  ;;  %v1213_v11 = vunpack.c.h.bf16 %v1211_v5  ;;  %v1274_v26 = vld [vmem:[%s1834_s14 + $0x8] sm:$0xff]   ;;  %s1565_s22 = sshra.s32 %s939_s17, 4  ;;  %s1571_s11 = scalar_lea.hbm %s1959_s8, 256  ;;  %s1566_s22 = int_to_ptr.hbm [resolvable:$true] %s1565_s22 }
  0x57   : > { %v1286_v9 = vld [vmem:[%s1841_s21 + $0x30] sm:$0xff]   ;;  %v1244_v12 = vunpack.c.l.bf16 %v1243_v6  ;;  %v1245_v13 = vunpack.c.h.bf16 %v1243_v6  ;;  %v1236_v14 = vunpack.c.l.bf16 %v1279_v8  ;;  %v1237_v15 = vunpack.c.h.bf16 %v1279_v8  ;;  %v1185_v23 = vld [vmem:[#allocation7] sm:$0xff]  ;;  %v1281_v27 = vld [vmem:[%s1841_s21 + $0x8] sm:$0xff]   ;;  %s1567_s16 = scalar_lea.hbm %s1566_s22, 128  ;;  %p1572_p9 = scmp.lt.s32.totalorder %s1566_s22, %s1959_s8 }
  0x58   : > { %577 = vmatpush.bf16.msra.mxu0 %v1191_v1  ;;  %1289 = vmatpush.bf16.msra.mxu3 %v1191_v1  ;;  %v1268_v16 = vunpack.c.l.bf16 %v1286_v9  ;;  %v1269_v17 = vunpack.c.h.bf16 %v1286_v9  ;;  %v1280_v28 = vld [vmem:[%s1834_s14 + $0x38] sm:$0xff]   ;;  %v1216_v30 = vunpack.c.l.bf16 %v1274_v26  ;;  %v1217_v31 = vunpack.c.h.bf16 %v1274_v26  ;;  %v1275_v44 = vld [vmem:[%s1834_s14 + $0x10] sm:$0xff]   ;;  %v1277_v63 = vld [vmem:[%s1834_s14 + $0x20] sm:$0xff]   ;;  %p1568_p1 = scmp.ne.s32.totalorder %s1566_s22, %s1567_s16  ;;  %p1573_p10 = scmp.lt.s32.totalorder %s1571_s11, %s1567_s16 }
  0x59   : > { %v484_v19 = vmul.f32 %v1244_v12, %v1212_v10  ;;  %v485_v20 = vmul.f32 %v1245_v13, %v1213_v11  ;;  %v1287_v29 = vld [vmem:[%s1841_s21 + $0x38] sm:$0xff]   ;;  %v1248_v32 = vunpack.c.l.bf16 %v1281_v27  ;;  %v1249_v33 = vunpack.c.h.bf16 %v1281_v27  ;;  %v1282_v45 = vld [vmem:[%s1841_s21 + $0x10] sm:$0xff]   ;;  %v1284_v0 = vld [vmem:[%s1841_s21 + $0x20] sm:$0xff]  }
  0x5a   : > { %v496_v21 = vmul.f32 %v1268_v16, %v1236_v14  ;;  %v497_v22 = vmul.f32 %v1269_v17, %v1237_v15  ;;  %v1240_v34 = vunpack.c.l.bf16 %v1280_v28  ;;  %v1241_v35 = vunpack.c.h.bf16 %v1280_v28  ;;  %v1276_v53 = vld [vmem:[%s1834_s14 + $0x18] sm:$0xff]   ;;  %v1199_v1 = vld [vmem:[#allocation8 + $0x30] sm:$0xff]  ;;  %v1198_v6 = vld [vmem:[#allocation8 + $0x28] sm:$0xff]  ;;  %p1569_p4 = pnand %p1568_p1, %p1775_p7  ;;  %p1574_p2 = por %p1573_p10, %p1572_p9 }
  0x5b   : > { %v500_v24 = vpack.c.bf16 %v485_v20, %v484_v19  ;;  %v1272_v36 = vunpack.c.l.bf16 %v1287_v29  ;;  %v1273_v37 = vunpack.c.h.bf16 %v1287_v29  ;;  %v486_v38 = vmul.f32 %v1248_v32, %v1216_v30  ;;  %v1283_v54 = vld [vmem:[%s1841_s21 + $0x18] sm:$0xff]   ;;  %v1197_v9 = vld [vmem:[#allocation8 + $0x20] sm:$0xff]  ;;  %v1278_v11 = vld [vmem:[%s1834_s14 + $0x28] sm:$0xff]   ;;  %s924_s14 = scalar_lea.sflag [#allocation4], %s1830_s23 }
  0x5c   : > { %578 = vmatpush.bf16.msra.mxu0 %v1190_v2  ;;  %1290 = vmatpush.bf16.msra.mxu3 %v1190_v2  ;;  %v506_v25 = vpack.c.bf16 %v497_v22, %v496_v21  ;;  %v487_v39 = vmul.f32 %v1249_v33, %v1217_v31  ;;  %v1220_v46 = vunpack.c.l.bf16 %v1275_v44  ;;  %v1221_v47 = vunpack.c.h.bf16 %v1275_v44  ;;  %v1200_v62 = vld [vmem:[#allocation8 + $0x38] sm:$0xff]  ;;  %v1285_v12 = vld [vmem:[%s1841_s21 + $0x28] sm:$0xff]   ;;  %v1195_v21 = vld [vmem:[#allocation8 + $0x10] sm:$0xff]  ;;  %p1570_p8 = pneg %p1569_p4 }
  0x5d   : > { %v498_v40 = vmul.f32 %v1272_v36, %v1240_v34  ;;  %v499_v41 = vmul.f32 %v1273_v37, %v1241_v35  ;;  %v1252_v48 = vunpack.c.l.bf16 %v1282_v45  ;;  %v1253_v49 = vunpack.c.h.bf16 %v1282_v45  ;;  %717 = vmatpush.bf16.msra.mxu1 %v1200_v62  ;;  %v1196_v20 = vld [vmem:[#allocation8 + $0x18] sm:$0xff]  ;;  %v1194_v22 = vld [vmem:[#allocation8 + $0x8] sm:$0xff] }
  0x5e   : > { %v501_v42 = vpack.c.bf16 %v487_v39, %v486_v38  ;;  %v1224_v55 = vunpack.c.l.bf16 %v1276_v53  ;;  %v1225_v56 = vunpack.c.h.bf16 %v1276_v53  ;;  %v1256_v57 = vunpack.c.l.bf16 %v1283_v54  ;;  %p1575_p11 = pnand %p1574_p2, %p1570_p8 }
  0x5f   : > { %v507_v43 = vpack.c.bf16 %v499_v41, %v498_v40  ;;  %v488_v50 = vmul.f32 %v1252_v48, %v1220_v46  ;;  %v489_v51 = vmul.f32 %v1253_v49, %v1221_v47  ;;  %v1257_v58 = vunpack.c.h.bf16 %v1283_v54 }
  0x60   : > { %579 = vmatpush.bf16.msra.mxu0 %v1189_v3  ;;  %1291 = vmatpush.bf16.msra.mxu3 %v1189_v3  ;;  %v490_v59 = vmul.f32 %v1256_v57, %v1224_v55  ;;  %v1228_v2 = vunpack.c.l.bf16 %v1277_v63  ;;  %v1229_v3 = vunpack.c.h.bf16 %v1277_v63  ;;  %v1261_v5 = vunpack.c.h.bf16 %v1284_v0 }
  0x61   : > { %v502_v52 = vpack.c.bf16 %v489_v51, %v488_v50  ;;  %v491_v60 = vmul.f32 %v1257_v58, %v1225_v56  ;;  %718 = vmatpush.bf16.msra.mxu1 %v1199_v1  ;;  %v1232_v13 = vunpack.c.l.bf16 %v1278_v11  ;;  %v1233_v14 = vunpack.c.h.bf16 %v1278_v11 }
  0x62   : > { %v493_v8 = vmul.f32 %v1261_v5, %v1229_v3  ;;  %v1264_v15 = vunpack.c.l.bf16 %v1285_v12  ;;  %v1265_v16 = vunpack.c.h.bf16 %v1285_v12  ;;  %v1208_v3 = vld [vmem:[#allocation10 + $0x38] sm:$0xff]  ;;  %v1207_v5 = vld [vmem:[#allocation10 + $0x30] sm:$0xff] }
  0x63   : > { %v503_v61 = vpack.c.bf16 %v491_v60, %v490_v59  ;;  %858 = vmatpush.bf16.msra.mxu2 %v1208_v3 }
  0x64   : > { %580 = vmatpush.bf16.msra.mxu0 %v1188_v4  ;;  %1292 = vmatpush.bf16.msra.mxu3 %v1188_v4  ;;  %v1260_v4 = vunpack.c.l.bf16 %v1284_v0  ;;  %v494_v17 = vmul.f32 %v1264_v15, %v1232_v13 }
  0x65   : > { %719 = vmatpush.bf16.msra.mxu1 %v1198_v6 }
  0x67   : > { %859 = vmatpush.bf16.msra.mxu2 %v1207_v5 }
  0x68   : > { %581 = vmatpush.bf16.msra.mxu0 %v1187_v7  ;;  %1293 = vmatpush.bf16.msra.mxu3 %v1187_v7  ;;  %v492_v7 = vmul.f32 %v1260_v4, %v1228_v2 }
  0x69   : > { %720 = vmatpush.bf16.msra.mxu1 %v1197_v9 }
  0x6a   : > { %v504_v10 = vpack.c.bf16 %v493_v8, %v492_v7 }
  0x6c   : > { %582 = vmatpush.bf16.msra.mxu0 %v1186_v18  ;;  %1294 = vmatpush.bf16.msra.mxu3 %v1186_v18  ;;  %v495_v18 = vmul.f32 %v1265_v16, %v1233_v14 }
  0x6d   : > { %721 = vmatpush.bf16.msra.mxu1 %v1196_v20 }
  0x6e   : > { %v505_v19 = vpack.c.bf16 %v495_v18, %v494_v17 }
  0x70   : > { %583 = vmatpush.bf16.msra.mxu0 %v1185_v23  ;;  %1295 = vmatpush.bf16.msra.mxu3 %v1185_v23  ;;  %v1193_v23 = vld [vmem:[#allocation8] sm:$0xff] }
  0x71   : > { %722 = vmatpush.bf16.msra.mxu1 %v1195_v21 }
  0x73   : > { %584 = vmatmul.bf16.vlgmr.msra.gmra.mxu0 %v500_v24  ;;  %614 = vmatmul.bf16.vlgmr.msra.gmra.mxu3 %v506_v25  ;;  %v1874_v25 = vld [vmem:[%s1954_s3] ss:$0 sm:$0xff] }
  0x74   : > { %1296 = vmatpush.bf16.msrb.mxu3 %v1200_v62 }
  0x75   : > { %723 = vmatpush.bf16.msra.mxu1 %v1194_v22 }
  0x78   : > { %1297 = vmatpush.bf16.msrb.mxu3 %v1199_v1 }
  0x79   : > { %724 = vmatpush.bf16.msra.mxu1 %v1193_v23 }
  0x7c   : > { %1298 = vmatpush.bf16.msrb.mxu3 %v1198_v6  ;;  %v1206_v6 = vld [vmem:[#allocation10 + $0x28] sm:$0xff] }
  0x7d   : > { %860 = vmatpush.bf16.msra.mxu2 %v1206_v6 }
  0x80   : > { %1299 = vmatpush.bf16.msrb.mxu3 %v1197_v9 }
  0x83   : > { %589 = vmatmul.bf16.gmra.mxu0 %v501_v42  ;;  %619 = vmatmul.bf16.gmra.mxu3 %v507_v43 }
  0x84   : > { %1300 = vmatpush.bf16.msrb.mxu3 %v1196_v20 }
  0x88   : > { %1301 = vmatpush.bf16.msrb.mxu3 %v1195_v21  ;;  %v1204_v21 = vld [vmem:[#allocation10 + $0x18] sm:$0xff] }
  0x8c   : > { %1302 = vmatpush.bf16.msrb.mxu3 %v1194_v22  ;;  %v1203_v22 = vld [vmem:[#allocation10 + $0x10] sm:$0xff] }
  0x90   : > { %1303 = vmatpush.bf16.msrb.mxu3 %v1193_v23  ;;  %v1202_v23 = vld [vmem:[#allocation10 + $0x8] sm:$0xff] }
  0x93   : > { %594 = vmatmul.bf16.gmra.mxu0 %v502_v52 }
  0x94   : > { %1304 = vmatpush.bf16.msra.mxu3 %v1208_v3 }
  0x98   : > { %1305 = vmatpush.bf16.msra.mxu3 %v1207_v5 }
  0x9c   : > { %1306 = vmatpush.bf16.msra.mxu3 %v1206_v6 }
  0xa3   : > { %599 = vmatmul.bf16.gmra.mxu0 %v503_v61 }
  0xb3   : > { %604 = vmatmul.bf16.gmra.mxu0 %v504_v10  ;;  %v1205_v10 = vld [vmem:[#allocation10 + $0x20] sm:$0xff] }
  0xb4   : > { %861 = vmatpush.bf16.msra.mxu2 %v1205_v10  ;;  %1307 = vmatpush.bf16.msra.mxu3 %v1205_v10 }
  0xb8   : > { %862 = vmatpush.bf16.msra.mxu2 %v1204_v21  ;;  %1308 = vmatpush.bf16.msra.mxu3 %v1204_v21 }
  0xbc   : > { %863 = vmatpush.bf16.msra.mxu2 %v1203_v22  ;;  %1309 = vmatpush.bf16.msra.mxu3 %v1203_v22 }
  0xc0   : > { %864 = vmatpush.bf16.msra.mxu2 %v1202_v23  ;;  %1310 = vmatpush.bf16.msra.mxu3 %v1202_v23 }
  0xc3   : > { %609 = vmatmul.bf16.gmra.mxu0 %v505_v19 }
  0xf0   : > { %v585_v24 = vpop.f32.mrf.mxu0 }
  0xf1   : > { %v586_v27 = vadd.f32 %v1874_v25, %v585_v24  ;;  %v1201_v24 = vld [vmem:[#allocation10] sm:$0xff] }
  0xf2   : > { %865 = vmatpush.bf16.msra.mxu2 %v1201_v24  ;;  %1311 = vmatpush.bf16.msra.mxu3 %v1201_v24 }
  0xf3   : > { %v625_v30 = vmax.f32 %v586_v27, 0.0 }
  0xf6   : > { %v615_v26 = vpop.f32.mrf.mxu3 }
  0xf7   : > { %v616_v32 = vadd.f32 %v1874_v25, %v615_v26 }
  0xf8   : > { %v587_v28 = vpop.f32.mrf.mxu0 }
  0xf9   : > { %v588_v29 = vadd.f32 %v1874_v25, %v587_v28  ;;  %v637_v35 = vmax.f32 %v616_v32, 0.0 }
  0xfb   : > { %v626_v31 = vmax.f32 %v588_v29, 0.0 }
  0xfd   : > { %v641_v33 = vpack.c.bf16 %v626_v31, %v625_v30 }
  0xfe   : > { %v617_v34 = vpop.f32.mrf.mxu3 }
  0xff   : > { %725 = vmatmul.bf16.vlgmr.msra.gmra.mxu1 %v641_v33  ;;  %v618_v36 = vadd.f32 %v1874_v25, %v617_v34 }
 0x100   : > { %v590_v37 = vpop.f32.mrf.mxu0 }
 0x101   : > { %v638_v38 = vmax.f32 %v618_v36, 0.0  ;;  %v591_v41 = vadd.f32 %v1874_v25, %v590_v37 }
 0x103   : > { %v647_v39 = vpack.c.bf16 %v638_v38, %v637_v35  ;;  %v627_v44 = vmax.f32 %v591_v41, 0.0 }
 0x105   : > { %755 = vmatmul.bf16.vlgmr.msrb.gmra.mxu3 %v647_v39 }
 0x106   : > { %v620_v40 = vpop.f32.mrf.mxu3 }
 0x107   : > { %v621_v46 = vadd.f32 %v1874_v25, %v620_v40 }
 0x108   : > { %v592_v42 = vpop.f32.mrf.mxu0 }
 0x109   : > { %v593_v43 = vadd.f32 %v1874_v25, %v592_v42  ;;  %v639_v49 = vmax.f32 %v621_v46, 0.0 }
 0x10b   : > { %v628_v45 = vmax.f32 %v593_v43, 0.0 }
 0x10d   : > { %v642_v47 = vpack.c.bf16 %v628_v45, %v627_v44 }
 0x10e   : > { %v622_v48 = vpop.f32.mrf.mxu3 }
 0x10f   : > { %730 = vmatmul.bf16.gmra.mxu1 %v642_v47  ;;  %v623_v50 = vadd.f32 %v1874_v25, %v622_v48 }
 0x110   : > { %v595_v51 = vpop.f32.mrf.mxu0 }
 0x111   : > { %v640_v52 = vmax.f32 %v623_v50, 0.0  ;;  %v596_v54 = vadd.f32 %v1874_v25, %v595_v51 }
 0x113   : > { %v648_v53 = vpack.c.bf16 %v640_v52, %v639_v49  ;;  %v629_v57 = vmax.f32 %v596_v54, 0.0 }
 0x115   : > { %760 = vmatmul.bf16.gmra.mxu3 %v648_v53 }
 0x118   : > { %v597_v55 = vpop.f32.mrf.mxu0 }
 0x119   : > { %v598_v56 = vadd.f32 %v1874_v25, %v597_v55 }
 0x11b   : > { %v630_v58 = vmax.f32 %v598_v56, 0.0 }
 0x11d   : > { %v643_v59 = vpack.c.bf16 %v630_v58, %v629_v57 }
 0x11f   : > { %735 = vmatmul.bf16.gmra.mxu1 %v643_v59 }
 0x120   : > { %v600_v60 = vpop.f32.mrf.mxu0 }
 0x121   : > { %v601_v61 = vadd.f32 %v1874_v25, %v600_v60 }
 0x123   : > { %v631_v0 = vmax.f32 %v601_v61, 0.0 }
 0x128   : > { %v602_v62 = vpop.f32.mrf.mxu0 }
 0x129   : > { %v603_v63 = vadd.f32 %v1874_v25, %v602_v62 }
 0x12b   : > { %v632_v1 = vmax.f32 %v603_v63, 0.0 }
 0x12d   : > { %v644_v2 = vpack.c.bf16 %v632_v1, %v631_v0 }
 0x12f   : > { %740 = vmatmul.bf16.gmra.mxu1 %v644_v2 }
 0x130   : > { %v605_v4 = vpop.f32.mrf.mxu0 }
 0x131   : > { %v606_v7 = vadd.f32 %v1874_v25, %v605_v4 }
 0x133   : > { %v633_v11 = vmax.f32 %v606_v7, 0.0 }
 0x138   : > { %v607_v8 = vpop.f32.mrf.mxu0 }
 0x139   : > { %v608_v9 = vadd.f32 %v1874_v25, %v607_v8 }
 0x13b   : > { %v634_v12 = vmax.f32 %v608_v9, 0.0 }
 0x13d   : > { %v645_v13 = vpack.c.bf16 %v634_v12, %v633_v11 }
 0x13f   : > { %745 = vmatmul.bf16.gmra.mxu1 %v645_v13 }
 0x140   : > { %v610_v14 = vpop.f32.mrf.mxu0 }
 0x141   : > { %v611_v15 = vadd.f32 %v1874_v25, %v610_v14 }
 0x143   : > { %v635_v18 = vmax.f32 %v611_v15, 0.0 }
 0x148   : > { %v612_v16 = vpop.f32.mrf.mxu0 }
 0x149   : > { %v613_v17 = vadd.f32 %v1874_v25, %v612_v16  ;;  %v1399_v25 = vld [vmem:[%s1956_s5] ss:$0 sm:$0xff] }
 0x14b   : > { %v636_v19 = vmax.f32 %v613_v17, 0.0 }
 0x14d   : > { %v646_v20 = vpack.c.bf16 %v636_v19, %v635_v18  ;;  %v1400_v18 = vld [vmem:[%s1958_s7] ss:$0 sm:$0xff] }
 0x14f   : > { %750 = vmatmul.bf16.gmra.mxu1 %v646_v20 }
 0x17c   : > { %v726_v26 = vpop.f32.mrf.mxu1 }
 0x17d   : > { %v727_v27 = vadd.f32 %v1399_v25, %v726_v26 }
 0x17f   : > { %v766_v30 = vmax.f32 %v727_v27, 0.0 }
 0x184   : > { %v728_v28 = vpop.f32.mrf.mxu1 }
 0x185   : > { %v729_v29 = vadd.f32 %v1399_v25, %v728_v28 }
 0x187   : > { %v767_v31 = vmax.f32 %v729_v29, 0.0 }
 0x188   : > { %v756_v32 = vpop.f32.mrf.mxu3 }
 0x189   : > { %v782_v33 = vpack.c.bf16 %v767_v31, %v766_v30  ;;  %v757_v35 = vadd.f32 %v1399_v25, %v756_v32 }
 0x18b   : > { %866 = vmatmul.bf16.vlgmr.msra.gmra.mxu2 %v782_v33  ;;  %v778_v37 = vmax.f32 %v757_v35, 0.0 }
 0x18c   : > { %v731_v34 = vpop.f32.mrf.mxu1 }
 0x18d   : > { %v732_v39 = vadd.f32 %v1399_v25, %v731_v34 }
 0x18f   : > { %v768_v44 = vmax.f32 %v732_v39, 0.0 }
 0x190   : > { %v758_v36 = vpop.f32.mrf.mxu3 }
 0x191   : > { %v759_v38 = vadd.f32 %v1399_v25, %v758_v36 }
 0x193   : > { %v779_v40 = vmax.f32 %v759_v38, 0.0 }
 0x194   : > { %v733_v41 = vpop.f32.mrf.mxu1 }
 0x195   : > { %v734_v42 = vadd.f32 %v1399_v25, %v733_v41  ;;  %v788_v43 = vpack.c.bf16 %v779_v40, %v778_v37 }
 0x197   : > { %v769_v45 = vmax.f32 %v734_v42, 0.0  ;;  %896 = vmatmul.bf16.vlgmr.msra.gmra.mxu3 %v788_v43 }
 0x198   : > { %v761_v46 = vpop.f32.mrf.mxu3 }
 0x199   : > { %v783_v47 = vpack.c.bf16 %v769_v45, %v768_v44  ;;  %v762_v49 = vadd.f32 %v1399_v25, %v761_v46 }
 0x19b   : > { %871 = vmatmul.bf16.gmra.mxu2 %v783_v47  ;;  %v780_v51 = vmax.f32 %v762_v49, 0.0 }
 0x19c   : > { %v736_v48 = vpop.f32.mrf.mxu1 }
 0x19d   : > { %v737_v53 = vadd.f32 %v1399_v25, %v736_v48 }
 0x19f   : > { %v770_v58 = vmax.f32 %v737_v53, 0.0 }
 0x1a0   : > { %v763_v50 = vpop.f32.mrf.mxu3 }
 0x1a1   : > { %v764_v52 = vadd.f32 %v1399_v25, %v763_v50 }
 0x1a3   : > { %v781_v54 = vmax.f32 %v764_v52, 0.0 }
 0x1a4   : > { %v738_v55 = vpop.f32.mrf.mxu1 }
 0x1a5   : > { %v739_v56 = vadd.f32 %v1399_v25, %v738_v55  ;;  %v789_v57 = vpack.c.bf16 %v781_v54, %v780_v51 }
 0x1a7   : > { %v771_v59 = vmax.f32 %v739_v56, 0.0  ;;  %901 = vmatmul.bf16.gmra.mxu3 %v789_v57 }
 0x1a9   : > { %v784_v60 = vpack.c.bf16 %v771_v59, %v770_v58 }
 0x1ab   : > { %876 = vmatmul.bf16.gmra.mxu2 %v784_v60 }
 0x1ac   : > { %v741_v61 = vpop.f32.mrf.mxu1 }
 0x1ad   : > { %v742_v62 = vadd.f32 %v1399_v25, %v741_v61 }
 0x1af   : > { %v772_v1 = vmax.f32 %v742_v62, 0.0 }
 0x1b4   : > { %v743_v63 = vpop.f32.mrf.mxu1 }
 0x1b5   : > { %v744_v0 = vadd.f32 %v1399_v25, %v743_v63 }
 0x1b7   : > { %v773_v2 = vmax.f32 %v744_v0, 0.0 }
 0x1b9   : > { %v785_v3 = vpack.c.bf16 %v773_v2, %v772_v1 }
 0x1bb   : > { %881 = vmatmul.bf16.gmra.mxu2 %v785_v3 }
 0x1bc   : > { %v746_v4 = vpop.f32.mrf.mxu1 }
 0x1bd   : > { %v747_v5 = vadd.f32 %v1399_v25, %v746_v4 }
 0x1bf   : > { %v774_v8 = vmax.f32 %v747_v5, 0.0 }
 0x1c4   : > { %v748_v6 = vpop.f32.mrf.mxu1 }
 0x1c5   : > { %v749_v7 = vadd.f32 %v1399_v25, %v748_v6 }
 0x1c7   : > { %v775_v9 = vmax.f32 %v749_v7, 0.0 }
 0x1c9   : > { %v786_v10 = vpack.c.bf16 %v775_v9, %v774_v8 }
 0x1cb   : > { %886 = vmatmul.bf16.gmra.mxu2 %v786_v10 }
 0x1cc   : > { %v751_v11 = vpop.f32.mrf.mxu1 }
 0x1cd   : > { %v752_v12 = vadd.f32 %v1399_v25, %v751_v11 }
 0x1cf   : > { %v776_v15 = vmax.f32 %v752_v12, 0.0 }
 0x1d4   : > { %v753_v13 = vpop.f32.mrf.mxu1 }
 0x1d5   : > { %v754_v14 = vadd.f32 %v1399_v25, %v753_v13 }
 0x1d7   : > { %v777_v16 = vmax.f32 %v754_v14, 0.0 }
 0x1d9   : > { %v787_v17 = vpack.c.bf16 %v777_v16, %v776_v15 }
 0x1db   : > { %891 = vmatmul.bf16.gmra.mxu2 %v787_v17 }
 0x20e   : > { %v867_v19 = vpop.f32.mrf.mxu2 }
 0x20f   : > { %v868_v20 = vadd.f32 %v1400_v18, %v867_v19 }
 0x211   : > { %907 = vst [vmem:[%s1899_s15] sm:$0xff] %v868_v20 }
 0x216   : > { %v869_v21 = vpop.f32.mrf.mxu2 }
 0x217   : > { %v870_v22 = vadd.f32 %v1400_v18, %v869_v21 }
 0x219   : > { %908 = vst [vmem:[%s1899_s15 + $0x8] sm:$0xff] %v870_v22 }
 0x21a   : > { %v897_v23 = vpop.f32.mrf.mxu3 }
 0x21b   : > { %v898_v24 = vadd.f32 %v1400_v18, %v897_v23 }
 0x21d   : > { %919 = vst [vmem:[%s1899_s15 + $0x60] sm:$0xff] %v898_v24 }
 0x21e   : > { %v872_v26 = vpop.f32.mrf.mxu2 }
 0x21f   : > { %v873_v25 = vadd.f32 %v1400_v18, %v872_v26 }
 0x221   : > { %909 = vst [vmem:[%s1899_s15 + $0x10] sm:$0xff] %v873_v25 }
 0x222   : > { %v899_v27 = vpop.f32.mrf.mxu3 }
 0x223   : > { %v900_v28 = vadd.f32 %v1400_v18, %v899_v27 }
 0x225   : > { %920 = vst [vmem:[%s1899_s15 + $0x68] sm:$0xff] %v900_v28 }
 0x226   : > { %v874_v29 = vpop.f32.mrf.mxu2 }
 0x227   : > { %v875_v30 = vadd.f32 %v1400_v18, %v874_v29 }
 0x229   : > { %910 = vst [vmem:[%s1899_s15 + $0x18] sm:$0xff] %v875_v30 }
 0x22a   : > { %v902_v31 = vpop.f32.mrf.mxu3 }
 0x22b   : > { %v903_v32 = vadd.f32 %v1400_v18, %v902_v31 }
 0x22d   : > { %921 = vst [vmem:[%s1899_s15 + $0x70] sm:$0xff] %v903_v32 }
 0x22e   : > { %v877_v33 = vpop.f32.mrf.mxu2 }
 0x22f   : > { %v878_v34 = vadd.f32 %v1400_v18, %v877_v33 }
 0x231   : > { %911 = vst [vmem:[%s1899_s15 + $0x20] sm:$0xff] %v878_v34 }
 0x232   : > { %v904_v35 = vpop.f32.mrf.mxu3 }
 0x233   : > { %v905_v36 = vadd.f32 %v1400_v18, %v904_v35 }
 0x235   : > { %922 = vst [vmem:[%s1899_s15 + $0x78] sm:$0xff] %v905_v36 }
 0x236   : > { %v879_v37 = vpop.f32.mrf.mxu2 }
 0x237   : > { %v880_v38 = vadd.f32 %v1400_v18, %v879_v37 }
 0x239   : > { %912 = vst [vmem:[%s1899_s15 + $0x28] sm:$0xff] %v880_v38 }
 0x23e   : > { %v882_v39 = vpop.f32.mrf.mxu2 }
 0x23f   : > { %v883_v40 = vadd.f32 %v1400_v18, %v882_v39 }
 0x241   : > { %913 = vst [vmem:[%s1899_s15 + $0x30] sm:$0xff] %v883_v40 }
 0x246   : > { %v884_v41 = vpop.f32.mrf.mxu2 }
 0x247   : > { %v885_v42 = vadd.f32 %v1400_v18, %v884_v41 }
 0x249   : > { %914 = vst [vmem:[%s1899_s15 + $0x38] sm:$0xff] %v885_v42 }
 0x24e   : > { %v887_v43 = vpop.f32.mrf.mxu2 }
 0x24f   : > { %v888_v44 = vadd.f32 %v1400_v18, %v887_v43 }
 0x251   : > { %915 = vst [vmem:[%s1899_s15 + $0x40] sm:$0xff] %v888_v44 }
 0x256   : > { %v889_v45 = vpop.f32.mrf.mxu2 }
 0x257   : > { %v890_v46 = vadd.f32 %v1400_v18, %v889_v45 }
 0x259   : > { %916 = vst [vmem:[%s1899_s15 + $0x48] sm:$0xff] %v890_v46 }
 0x25e   : > { %v892_v47 = vpop.f32.mrf.mxu2 }
 0x25f   : > { %v893_v48 = vadd.f32 %v1400_v18, %v892_v47 }
 0x261   : > { %917 = vst [vmem:[%s1899_s15 + $0x50] sm:$0xff] %v893_v48 }
 0x266   : > { %v894_v49 = vpop.f32.mrf.mxu2 }
 0x267   : > { %v895_v50 = vadd.f32 %v1400_v18, %v894_v49 }
 0x269   : > { %918 = vst [vmem:[%s1899_s15 + $0x58] sm:$0xff] %v895_v50 }
 0x26a   : > { %1578 = shalt.err (!%p1575_p11)
}
 0x26b   : > { %s1636_s23 = smov 128   ;;  %s1637_s6 = smov 8  }
 0x26c   : > { %1328 = dma.vmem_to_hbm [thread:$0]  (%p1775_p7), %s937_s0, 2048, %s939_s17, %s924_s14, %s1636_s23, %s1636_s23, %s1637_s6  }
 0x26d PF: > { %s953_s29 = sand.u32 1, %s1617_s27   ;;  %p1983_p12 = scmp.ge.s32.totalorder %s1629_s30, 2 }
 0x26e   : > { %s954_s19 = scalar_lea.sflag [#allocation4], %s953_s29 }
 0x26f   : > { %p1348_p13 = pnand %p1983_p12, %p1718_p6 }
 0x271   : > { %p1349_p0 = pneg %p1348_p13 }
 0x273   : > { %1612 = dma.done.wait (%p1349_p0), %s954_s19, 2048  }
 0x274   : > { %1614 = vsyncadd (%p1349_p0), %s954_s19, 4294965248  ;;  %s1984_s2 = sld [smem:[#allocation17_spill]]  ;;  %p25_p3 = scmp.ge.s32.totalorder %s1756_s18, 4  }
 0x275   : > { %s1985_s29 = sld [smem:[#allocation18_spill]]  ;;  %s1986_s27 = smov %s1621_s28 }
 0x276   : > { %s1988_s30 = smov %s1756_s18  ;;  %27 = sbr.rel (!%p25_p3) target bundleno = 13 (0xd), region = 122 }
 0x27a   : > { %s1987_s28 = smov %s1984_s2 }
 0x27b   :  { %960 = vsyncpa [#allocation3], 1 }
 0x27c   :  { %962 = vsyncpa [#allocation3 + $0x1], 1 }
 0x27d   :  { %963 = vsyncpa [#allocation6], 1 }
 0x27e   :  { %965 = vsyncpa [#allocation6 + $0x1], 1 }
 0x27f   :  { %966 = vsyncpa [#allocation9], 1 }
 0x280   :  { %967 = vsyncpa [#allocation4], 1 }
 0x281   :  { %969 = vsyncpa [#allocation4 + $0x1], 1 }

// kernel: tpu_custom_call.1
= control target key start
LH: loop header
LB: loop body
LE: loop exit
PB: predicated region body
PF: predicated region fallthrough
CT: control target
= control target key end

     0   :  { %s1951_s0 = inlined_call_operand.hbm [shape: bf16[256,128], index: 0, kind: input, shape index: {}]   ;;  %s1952_s1 = inlined_call_operand.hbm [shape: bf16[256,128], index: 1, kind: input, shape index: {}]   ;;  %s1953_s2 = inlined_call_operand.hbm [shape: bf16[128,128], index: 2, kind: input, shape index: {}]   ;;  %s1954_s3 = inlined_call_operand.vmem [shape: f32[1,128], index: 3, kind: input, shape index: {}]   ;;  %s1955_s4 = inlined_call_operand.hbm [shape: bf16[128,128], index: 4, kind: input, shape index: {}]   ;;  %s1956_s5 = inlined_call_operand.vmem [shape: f32[1,128], index: 5, kind: input, shape index: {}]   ;;  %s1957_s6 = inlined_call_operand.hbm [shape: bf16[128,128], index: 6, kind: input, shape index: {}]   ;;  %s1958_s7 = inlined_call_operand.vmem [shape: f32[1,128], index: 7, kind: input, shape index: {}]   ;;  %s1959_s8 = inlined_call_operand.hbm [shape: f32[256,128], index: 8, kind: output, shape index: {}]  }
   0x1   :  { %1965 = sst [smem:[#allocation19_spill]] %s1951_s0 }
   0x2   :  { %1966 = sst [smem:[#allocation20_spill]] %s1953_s2 }
   0x3   :  { %1967 = sst [smem:[#allocation21_spill]] %s1955_s4 }
   0x4   :  { %1968 = sst [smem:[#allocation22_spill]] %s1957_s6 }
   0x5   :  { %13 = vsyncpa [#allocation3], 0 }
   0x6   :  { %15 = vsyncpa [#allocation3 + $0x1], 0 }
   0x7   :  { %16 = vsyncpa [#allocation6], 0 }
   0x8   :  { %18 = vsyncpa [#allocation6 + $0x1], 0 }
   0x9   :  { %19 = vsyncpa [#allocation9], 0 }
   0xa   :  { %20 = vsyncpa [#allocation4], 0 }
   0xb   :  { %22 = vsyncpa [#allocation4 + $0x1], 0  ;;  %s1683_s27 = smov 0   ;;  %s1685_s28 = smov 0  }
   0xc   :  { %s1687_s29 = smov 0   ;;  %s1689_s30 = smov 0  }
   0xd LB: > { %1969 = sst [smem:[#allocation17_spill]] %s1625_s29  ;;  %s1704_s9 = sadd.s32 4294967295, %s1629_s30   ;;  %s1629_s30 = sphi %s1689_s30, %s1988_s30   ;;  %s1625_s29 = sphi %s1687_s29, %s1985_s29   ;;  %s1621_s28 = sphi %s1685_s28, %s1987_s28   ;;  %s1617_s27 = sphi %s1683_s27, %s1986_s27  }
   0xe   : > { %s1063_s10 = sadd.s32 4294967294, %s1629_s30   ;;  %p48_p0 = scmp.ne.s32.totalorder %s1621_s28, %s1617_s27 }
   0xf   : > { %p49_p1 = scmp.eq.s32.totalorder %s1704_s9, 0  ;;  %p224_p2 = scmp.eq.s32.totalorder %s1704_s9, 1 }
  0x10   : > { %p230_p3 = scmp.eq.s32.totalorder %s1063_s10, 1  ;;  %p1064_p5 = scmp.ge.s32.totalorder %s1629_s30, 1 }
  0x11   : > { %p1713_p4 = por %p49_p1, %p48_p0  ;;  %p237_p7 = scmp.lt.s32.totalorder %s1629_s30, 3 }
  0x12   : > { %p1718_p6 = por %p230_p3, %p48_p0  ;;  %s1972_s2 = sld [smem:[#allocation20_spill]] }
  0x13   : > { %p1726_p8 = pnand %p1064_p5, %p237_p7  ;;  %s1631_s17 = smov [#allocation7]  }
  0x14   : > { %s250_s18 = sshll.u32 %s1631_s17, 4  ;;  %s1975_s4 = sld [smem:[#allocation21_spill]]  ;;  %s251_s18 = int_to_ptr.vmem [resolvable:$true] %s250_s18 }
  0x15   : > { %p1330_p9 = pneg %p1726_p8  ;;  %s1960_s23 = smov 64  }
  0x16   : > { %s1962_s24 = smov 4   ;;  %s1634_s25 = smov [#allocation8]  }
  0x17   : > { %p1734_p10 = pnand %p1330_p9, %p49_p1  ;;  %s267_s26 = sshll.u32 %s1634_s25, 4  ;;  %s268_s26 = int_to_ptr.vmem [resolvable:$true] %s267_s26 }
  0x18   : > { %s248_s15 = sshll.u32 %s1972_s2, 4  ;;  %s1976_s6 = sld [smem:[#allocation22_spill]]  ;;  %s249_s15 = int_to_ptr.hbm [resolvable:$true] %s248_s15 }
  0x19   : > { %1333 = dma.hbm_to_vmem [thread:$0]  (!%p1734_p10), %s249_s15, 1024, %s251_s18, [#allocation6], %s1960_s23, %s1960_s23, %s1962_s24  }
  0x1a   : > { %s265_s22 = sshll.u32 %s1975_s4, 4  ;;  %s1635_s15 = smov [#allocation10]   ;;  %s266_s22 = int_to_ptr.hbm [resolvable:$true] %s265_s22 }
  0x1b   : > { %1336 = dma.hbm_to_vmem [thread:$0]  (!%p1734_p10), %s266_s22, 1024, %s268_s26, [#allocation9], %s1960_s23, %s1960_s23, %s1962_s24  }
  0x1c   : > { %s284_s17 = sshll.u32 %s1635_s15, 4  ;;  %s1756_s18 = sadd.s32 1, %s1629_s30   ;;  %s285_s17 = int_to_ptr.vmem [resolvable:$true] %s284_s17 }
  0x1d   : > { %s32_s20 = ssub.s32 %s1629_s30, %s1756_s18  ;;  %s35_s21 = sadd.s32 1, %s1625_s29 }
  0x1e   : > { %s282_s14 = sshll.u32 %s1976_s6, 4  ;;  %p33_p12 = scmp.eq.s32.totalorder %s32_s20, 0  ;;  %s283_s14 = int_to_ptr.hbm [resolvable:$true] %s282_s14 }
  0x1f   : > { %1339 = dma.hbm_to_vmem [thread:$0]  (!%p1734_p10), %s283_s14, 1024, %s285_s17, [#allocation9], %s1960_s23, %s1960_s23, %s1962_s24  }
  0x20   : > { %p42_p13 = scmp.ne.s32.totalorder %s1625_s29, %s1621_s28  ;;  %p43_p0 = scmp.eq.s32.totalorder %s1629_s30, 0 }
  0x21   : > { %p1354_p3 = scmp.lt.s32.totalorder %s1629_s30, 2  ;;  %s301_s19 = sand.u32 1, %s1625_s29  }
  0x22   : > { %s1771_s22 = scalar_select %p33_p12, %s1625_s29, %s35_s21  }
  0x23   : > { %p44_p5 = por %p43_p0, %p42_p13  ;;  %p1775_p7 = por %p224_p2, %p42_p13 }
  0x24   : > { %1977 = sst [smem:[#allocation18_spill]] %s1771_s22  ;;  %s1183_s26 = sshll.u32 %s1629_s30, 6 }
  0x25   : > { %s1069_s10 = sshll.u32 %s301_s19, 6  ;;  %s1979_s0 = sld [smem:[#allocation19_spill]] }
  0x26   : > { %s305_s20 = scalar_lea.vmem [#allocation2], %s1069_s10  ;;  %p1786_p9 = pnand %p1354_p3, %p44_p5 }
  0x27   : > { %s313_s23 = sshll.u32 %s305_s20, 4  ;;  %s332_s4 = scalar_lea.hbm %s1952_s1, %s1183_s26  ;;  %s314_s23 = int_to_ptr.vmem [resolvable:$true] %s313_s23 }
  0x28   : > { %s327_s6 = scalar_lea.vmem [#allocation5], %s1069_s10  ;;  %s333_s13 = sshll.u32 %s332_s4, 4  ;;  %s334_s13 = int_to_ptr.hbm [resolvable:$true] %s333_s13 }
  0x29   : > { %s1793_s22 = sshll.u32 %s327_s6, 4  ;;  %s302_s14 = scalar_lea.sflag [#allocation3], %s301_s19  ;;  %s336_s22 = int_to_ptr.vmem [resolvable:$true] %s1793_s22 }
  0x2a   : > { %p1495_p10 = pneg %p1786_p9 }
  0x2b   : > { %s310_s15 = scalar_lea.hbm %s1979_s0, %s1183_s26  ;;  %s1498_s24 = scalar_lea.hbm %s1979_s0, 128 }
  0x2c   : > { %s311_s17 = sshll.u32 %s310_s15, 4  ;;  %s312_s17 = int_to_ptr.hbm [resolvable:$true] %s311_s17 }
  0x2d   : > { %s1491_s15 = sshra.s32 %s312_s17, 4  ;;  %s1492_s15 = int_to_ptr.hbm [resolvable:$true] %s1491_s15 }
  0x2e   : > { %s1493_s20 = scalar_lea.hbm %s1492_s15, 64  ;;  %p1499_p0 = scmp.lt.s32.totalorder %s1492_s15, %s1979_s0 }
  0x2f   : > { %p1494_p2 = scmp.ne.s32.totalorder %s1492_s15, %s1493_s20  ;;  %p1500_p3 = scmp.lt.s32.totalorder %s1498_s24, %s1493_s20 }
  0x31   : > { %p1496_p12 = pnand %p1495_p10, %p1494_p2  ;;  %p1501_p5 = por %p1500_p3, %p1499_p0 }
  0x33   : > { %p1497_p13 = pneg %p1496_p12 }
  0x35   : > { %p1502_p11 = pnand %p1501_p5, %p1497_p13 }
  0x37   : > { %1505 = shalt.err (!%p1502_p11)
}
  0x38   : > { %s1981_s4 = smov 4   ;;  %s1982_s6 = smov 64  }
  0x39   : > { %1343 = dma.hbm_to_vmem [thread:$0]  (!%p1786_p9), %s312_s17, 1024, %s314_s23, %s302_s14, %s1982_s6, %s1982_s6, %s1981_s4  }
  0x3a   : > { %s323_s29 = sand.u32 1, %s1629_s30   ;;  %s1521_s2 = sshra.s32 %s334_s13, 4  ;;  %s1522_s2 = int_to_ptr.hbm [resolvable:$true] %s1521_s2 }
  0x3b   : > { %s324_s19 = scalar_lea.sflag [#allocation6], %s323_s29  ;;  %s1523_s15 = scalar_lea.hbm %s1522_s2, 64 }
  0x3c   : > { %p1524_p2 = scmp.ne.s32.totalorder %s1522_s2, %s1523_s15  ;;  %s1528_s26 = scalar_lea.hbm %s1952_s1, 128 }
  0x3d   : > { %p1529_p13 = scmp.lt.s32.totalorder %s1522_s2, %s1952_s1  ;;  %p1530_p0 = scmp.lt.s32.totalorder %s1528_s26, %s1523_s15 }
  0x3e   : > { %p1526_p11 = pnand %p1524_p2, %p1495_p10 }
  0x3f   : > { %p1531_p3 = por %p1530_p0, %p1529_p13 }
  0x40   : > { %p1527_p12 = pneg %p1526_p11 }
  0x42   : > { %p1532_p5 = pnand %p1531_p3, %p1527_p12 }
  0x44   : > { %1535 = shalt.err (!%p1532_p5)
}
  0x45   : > { %1346 = dma.hbm_to_vmem [thread:$0]  (!%p1786_p9), %s334_s13, 1024, %s336_s22, %s324_s19, %s1982_s6, %s1982_s6, %s1981_s4  }
  0x46   : > { %347 = sbr.rel (%p1726_p8) target bundleno = 621 (0x26d), region = 52  ;;  %s1830_s23 = sand.u32 (!%p1726_p8), 1, %s1621_s28  }
  0x47   : > { %s1076_s0 = sshll.u32 (!%p1726_p8), %s1830_s23, 6  ;;  %s350_s17 = scalar_lea.sflag (!%p1726_p8), [#allocation3], %s1830_s23 }
  0x48   : > { %s1834_s14 = scalar_lea.vmem (!%p1726_p8), [#allocation2], %s1076_s0 }
  0x4b   : > { %1596 = dma.done.wait (%p1713_p4), %s350_s17, 1024  }
  0x4c   : > { %1598 = vsyncadd (%p1713_p4), %s350_s17, 4294966272  ;;  %s359_s22 = sand.u32 1, %s1704_s9   ;;  %s1841_s21 = scalar_lea.vmem [#allocation5], %s1076_s0 }
  0x4d   : > { %s360_s16 = scalar_lea.sflag [#allocation6], %s359_s22 }
  0x4e   : > { %1600 = dma.done.wait (%p1713_p4), %s360_s16, 1024  }
  0x4f   : > { %1602 = vsyncadd (%p1713_p4), %s360_s16, 4294966272 }
  0x50   : > { %1604 = dma.done.wait (%p49_p1), [#allocation6], 1024  }
  0x51   : > { %1606 = vsyncadd (%p49_p1), [#allocation6], 4294966272 }
  0x52   : > { %1608 = dma.done.wait (%p49_p1), [#allocation9], 2048  }
  0x53   : > { %1610 = vsyncadd (%p49_p1), [#allocation9], 4294965248  ;;  %v1192_v0 = vld [vmem:[#allocation7 + $0x38] sm:$0xff]  ;;  %v1191_v1 = vld [vmem:[#allocation7 + $0x30] sm:$0xff]  ;;  %s1081_s29 = sshll.u32 %s1830_s23, 7  ;;  %s1209_s20 = sshll.u32 %s1704_s9, 7 }
  0x54   : > { %576 = vmatpush.bf16.msra.mxu0 %v1192_v0  ;;  %1288 = vmatpush.bf16.msra.mxu3 %v1192_v0  ;;  %v1190_v2 = vld [vmem:[#allocation7 + $0x28] sm:$0xff]  ;;  %v1189_v3 = vld [vmem:[#allocation7 + $0x20] sm:$0xff]  ;;  %v1188_v4 = vld [vmem:[#allocation7 + $0x18] sm:$0xff]  ;;  %s1899_s15 = scalar_lea.vmem [#allocation11], %s1081_s29  ;;  %s935_s10 = scalar_lea.hbm %s1959_s8, %s1209_s20 }
  0x55   : > { %v1211_v5 = vld [vmem:[%s1834_s14] sm:$0xff]   ;;  %v1187_v7 = vld [vmem:[#allocation7 + $0x10] sm:$0xff]  ;;  %v1186_v18 = vld [vmem:[#allocation7 + $0x8] sm:$0xff]  ;;  %s936_s0 = sshll.u32 %s1899_s15, 4  ;;  %s938_s17 = sshll.u32 %s935_s10, 4  ;;  %s937_s0 = int_to_ptr.vmem [resolvable:$true] %s936_s0  ;;  %s939_s17 = int_to_ptr.hbm [resolvable:$true] %s938_s17 }
  0x56   : > { %v1243_v6 = vld [vmem:[%s1841_s21] sm:$0xff]   ;;  %v1279_v8 = vld [vmem:[%s1834_s14 + $0x30] sm:$0xff]   ;;  %v1212_v10 = vunpack.c.l.bf16 %v1211_v5  ;;  %v1213_v11 = vunpack.c.h.bf16 %v1211_v5  ;;  %v1274_v26 = vld [vmem:[%s1834_s14 + $0x8] sm:$0xff]   ;;  %s1565_s22 = sshra.s32 %s939_s17, 4  ;;  %s1571_s11 = scalar_lea.hbm %s1959_s8, 256  ;;  %s1566_s22 = int_to_ptr.hbm [resolvable:$true] %s1565_s22 }
  0x57   : > { %v1286_v9 = vld [vmem:[%s1841_s21 + $0x30] sm:$0xff]   ;;  %v1244_v12 = vunpack.c.l.bf16 %v1243_v6  ;;  %v1245_v13 = vunpack.c.h.bf16 %v1243_v6  ;;  %v1236_v14 = vunpack.c.l.bf16 %v1279_v8  ;;  %v1237_v15 = vunpack.c.h.bf16 %v1279_v8  ;;  %v1185_v23 = vld [vmem:[#allocation7] sm:$0xff]  ;;  %v1281_v27 = vld [vmem:[%s1841_s21 + $0x8] sm:$0xff]   ;;  %s1567_s16 = scalar_lea.hbm %s1566_s22, 128  ;;  %p1572_p9 = scmp.lt.s32.totalorder %s1566_s22, %s1959_s8 }
  0x58   : > { %577 = vmatpush.bf16.msra.mxu0 %v1191_v1  ;;  %1289 = vmatpush.bf16.msra.mxu3 %v1191_v1  ;;  %v1268_v16 = vunpack.c.l.bf16 %v1286_v9  ;;  %v1269_v17 = vunpack.c.h.bf16 %v1286_v9  ;;  %v1280_v28 = vld [vmem:[%s1834_s14 + $0x38] sm:$0xff]   ;;  %v1216_v30 = vunpack.c.l.bf16 %v1274_v26  ;;  %v1217_v31 = vunpack.c.h.bf16 %v1274_v26  ;;  %v1275_v44 = vld [vmem:[%s1834_s14 + $0x10] sm:$0xff]   ;;  %v1277_v63 = vld [vmem:[%s1834_s14 + $0x20] sm:$0xff]   ;;  %p1568_p1 = scmp.ne.s32.totalorder %s1566_s22, %s1567_s16  ;;  %p1573_p10 = scmp.lt.s32.totalorder %s1571_s11, %s1567_s16 }
  0x59   : > { %v484_v19 = vmul.f32 %v1244_v12, %v1212_v10  ;;  %v485_v20 = vmul.f32 %v1245_v13, %v1213_v11  ;;  %v1287_v29 = vld [vmem:[%s1841_s21 + $0x38] sm:$0xff]   ;;  %v1248_v32 = vunpack.c.l.bf16 %v1281_v27  ;;  %v1249_v33 = vunpack.c.h.bf16 %v1281_v27  ;;  %v1282_v45 = vld [vmem:[%s1841_s21 + $0x10] sm:$0xff]   ;;  %v1284_v0 = vld [vmem:[%s1841_s21 + $0x20] sm:$0xff]  }
  0x5a   : > { %v496_v21 = vmul.f32 %v1268_v16, %v1236_v14  ;;  %v497_v22 = vmul.f32 %v1269_v17, %v1237_v15  ;;  %v1240_v34 = vunpack.c.l.bf16 %v1280_v28  ;;  %v1241_v35 = vunpack.c.h.bf16 %v1280_v28  ;;  %v1276_v53 = vld [vmem:[%s1834_s14 + $0x18] sm:$0xff]   ;;  %v1199_v1 = vld [vmem:[#allocation8 + $0x30] sm:$0xff]  ;;  %v1198_v6 = vld [vmem:[#allocation8 + $0x28] sm:$0xff]  ;;  %p1569_p4 = pnand %p1568_p1, %p1775_p7  ;;  %p1574_p2 = por %p1573_p10, %p1572_p9 }
  0x5b   : > { %v500_v24 = vpack.c.bf16 %v485_v20, %v484_v19  ;;  %v1272_v36 = vunpack.c.l.bf16 %v1287_v29  ;;  %v1273_v37 = vunpack.c.h.bf16 %v1287_v29  ;;  %v486_v38 = vmul.f32 %v1248_v32, %v1216_v30  ;;  %v1283_v54 = vld [vmem:[%s1841_s21 + $0x18] sm:$0xff]   ;;  %v1197_v9 = vld [vmem:[#allocation8 + $0x20] sm:$0xff]  ;;  %v1278_v11 = vld [vmem:[%s1834_s14 + $0x28] sm:$0xff]   ;;  %s924_s14 = scalar_lea.sflag [#allocation4], %s1830_s23 }
  0x5c   : > { %578 = vmatpush.bf16.msra.mxu0 %v1190_v2  ;;  %1290 = vmatpush.bf16.msra.mxu3 %v1190_v2  ;;  %v506_v25 = vpack.c.bf16 %v497_v22, %v496_v21  ;;  %v487_v39 = vmul.f32 %v1249_v33, %v1217_v31  ;;  %v1220_v46 = vunpack.c.l.bf16 %v1275_v44  ;;  %v1221_v47 = vunpack.c.h.bf16 %v1275_v44  ;;  %v1200_v62 = vld [vmem:[#allocation8 + $0x38] sm:$0xff]  ;;  %v1285_v12 = vld [vmem:[%s1841_s21 + $0x28] sm:$0xff]   ;;  %v1195_v21 = vld [vmem:[#allocation8 + $0x10] sm:$0xff]  ;;  %p1570_p8 = pneg %p1569_p4 }
  0x5d   : > { %v498_v40 = vmul.f32 %v1272_v36, %v1240_v34  ;;  %v499_v41 = vmul.f32 %v1273_v37, %v1241_v35  ;;  %v1252_v48 = vunpack.c.l.bf16 %v1282_v45  ;;  %v1253_v49 = vunpack.c.h.bf16 %v1282_v45  ;;  %717 = vmatpush.bf16.msra.mxu1 %v1200_v62  ;;  %v1196_v20 = vld [vmem:[#allocation8 + $0x18] sm:$0xff]  ;;  %v1194_v22 = vld [vmem:[#allocation8 + $0x8] sm:$0xff] }
  0x5e   : > { %v501_v42 = vpack.c.bf16 %v487_v39, %v486_v38  ;;  %v1224_v55 = vunpack.c.l.bf16 %v1276_v53  ;;  %v1225_v56 = vunpack.c.h.bf16 %v1276_v53  ;;  %v1256_v57 = vunpack.c.l.bf16 %v1283_v54  ;;  %p1575_p11 = pnand %p1574_p2, %p1570_p8 }
  0x5f   : > { %v507_v43 = vpack.c.bf16 %v499_v41, %v498_v40  ;;  %v488_v50 = vmul.f32 %v1252_v48, %v1220_v46  ;;  %v489_v51 = vmul.f32 %v1253_v49, %v1221_v47  ;;  %v1257_v58 = vunpack.c.h.bf16 %v1283_v54 }
  0x60   : > { %579 = vmatpush.bf16.msra.mxu0 %v1189_v3  ;;  %1291 = vmatpush.bf16.msra.mxu3 %v1189_v3  ;;  %v490_v59 = vmul.f32 %v1256_v57, %v1224_v55  ;;  %v1228_v2 = vunpack.c.l.bf16 %v1277_v63  ;;  %v1229_v3 = vunpack.c.h.bf16 %v1277_v63  ;;  %v1261_v5 = vunpack.c.h.bf16 %v1284_v0 }
  0x61   : > { %v502_v52 = vpack.c.bf16 %v489_v51, %v488_v50  ;;  %v491_v60 = vmul.f32 %v1257_v58, %v1225_v56  ;;  %718 = vmatpush.bf16.msra.mxu1 %v1199_v1  ;;  %v1232_v13 = vunpack.c.l.bf16 %v1278_v11  ;;  %v1233_v14 = vunpack.c.h.bf16 %v1278_v11 }
  0x62   : > { %v493_v8 = vmul.f32 %v1261_v5, %v1229_v3  ;;  %v1264_v15 = vunpack.c.l.bf16 %v1285_v12  ;;  %v1265_v16 = vunpack.c.h.bf16 %v1285_v12  ;;  %v1208_v3 = vld [vmem:[#allocation10 + $0x38] sm:$0xff]  ;;  %v1207_v5 = vld [vmem:[#allocation10 + $0x30] sm:$0xff] }
  0x63   : > { %v503_v61 = vpack.c.bf16 %v491_v60, %v490_v59  ;;  %858 = vmatpush.bf16.msra.mxu2 %v1208_v3 }
  0x64   : > { %580 = vmatpush.bf16.msra.mxu0 %v1188_v4  ;;  %1292 = vmatpush.bf16.msra.mxu3 %v1188_v4  ;;  %v1260_v4 = vunpack.c.l.bf16 %v1284_v0  ;;  %v494_v17 = vmul.f32 %v1264_v15, %v1232_v13 }
  0x65   : > { %719 = vmatpush.bf16.msra.mxu1 %v1198_v6 }
  0x67   : > { %859 = vmatpush.bf16.msra.mxu2 %v1207_v5 }
  0x68   : > { %581 = vmatpush.bf16.msra.mxu0 %v1187_v7  ;;  %1293 = vmatpush.bf16.msra.mxu3 %v1187_v7  ;;  %v492_v7 = vmul.f32 %v1260_v4, %v1228_v2 }
  0x69   : > { %720 = vmatpush.bf16.msra.mxu1 %v1197_v9 }
  0x6a   : > { %v504_v10 = vpack.c.bf16 %v493_v8, %v492_v7 }
  0x6c   : > { %582 = vmatpush.bf16.msra.mxu0 %v1186_v18  ;;  %1294 = vmatpush.bf16.msra.mxu3 %v1186_v18  ;;  %v495_v18 = vmul.f32 %v1265_v16, %v1233_v14 }
  0x6d   : > { %721 = vmatpush.bf16.msra.mxu1 %v1196_v20 }
  0x6e   : > { %v505_v19 = vpack.c.bf16 %v495_v18, %v494_v17 }
  0x70   : > { %583 = vmatpush.bf16.msra.mxu0 %v1185_v23  ;;  %1295 = vmatpush.bf16.msra.mxu3 %v1185_v23  ;;  %v1193_v23 = vld [vmem:[#allocation8] sm:$0xff] }
  0x71   : > { %722 = vmatpush.bf16.msra.mxu1 %v1195_v21 }
  0x73   : > { %584 = vmatmul.bf16.vlgmr.msra.gmra.mxu0 %v500_v24  ;;  %614 = vmatmul.bf16.vlgmr.msra.gmra.mxu3 %v506_v25  ;;  %v1874_v25 = vld [vmem:[%s1954_s3] ss:$0 sm:$0xff] }
  0x74   : > { %1296 = vmatpush.bf16.msrb.mxu3 %v1200_v62 }
  0x75   : > { %723 = vmatpush.bf16.msra.mxu1 %v1194_v22 }
  0x78   : > { %1297 = vmatpush.bf16.msrb.mxu3 %v1199_v1 }
  0x79   : > { %724 = vmatpush.bf16.msra.mxu1 %v1193_v23 }
  0x7c   : > { %1298 = vmatpush.bf16.msrb.mxu3 %v1198_v6  ;;  %v1206_v6 = vld [vmem:[#allocation10 + $0x28] sm:$0xff] }
  0x7d   : > { %860 = vmatpush.bf16.msra.mxu2 %v1206_v6 }
  0x80   : > { %1299 = vmatpush.bf16.msrb.mxu3 %v1197_v9 }
  0x83   : > { %589 = vmatmul.bf16.gmra.mxu0 %v501_v42  ;;  %619 = vmatmul.bf16.gmra.mxu3 %v507_v43 }
  0x84   : > { %1300 = vmatpush.bf16.msrb.mxu3 %v1196_v20 }
  0x88   : > { %1301 = vmatpush.bf16.msrb.mxu3 %v1195_v21  ;;  %v1204_v21 = vld [vmem:[#allocation10 + $0x18] sm:$0xff] }
  0x8c   : > { %1302 = vmatpush.bf16.msrb.mxu3 %v1194_v22  ;;  %v1203_v22 = vld [vmem:[#allocation10 + $0x10] sm:$0xff] }
  0x90   : > { %1303 = vmatpush.bf16.msrb.mxu3 %v1193_v23  ;;  %v1202_v23 = vld [vmem:[#allocation10 + $0x8] sm:$0xff] }
  0x93   : > { %594 = vmatmul.bf16.gmra.mxu0 %v502_v52 }
  0x94   : > { %1304 = vmatpush.bf16.msra.mxu3 %v1208_v3 }
  0x98   : > { %1305 = vmatpush.bf16.msra.mxu3 %v1207_v5 }
  0x9c   : > { %1306 = vmatpush.bf16.msra.mxu3 %v1206_v6 }
  0xa3   : > { %599 = vmatmul.bf16.gmra.mxu0 %v503_v61 }
  0xb3   : > { %604 = vmatmul.bf16.gmra.mxu0 %v504_v10  ;;  %v1205_v10 = vld [vmem:[#allocation10 + $0x20] sm:$0xff] }
  0xb4   : > { %861 = vmatpush.bf16.msra.mxu2 %v1205_v10  ;;  %1307 = vmatpush.bf16.msra.mxu3 %v1205_v10 }
  0xb8   : > { %862 = vmatpush.bf16.msra.mxu2 %v1204_v21  ;;  %1308 = vmatpush.bf16.msra.mxu3 %v1204_v21 }
  0xbc   : > { %863 = vmatpush.bf16.msra.mxu2 %v1203_v22  ;;  %1309 = vmatpush.bf16.msra.mxu3 %v1203_v22 }
  0xc0   : > { %864 = vmatpush.bf16.msra.mxu2 %v1202_v23  ;;  %1310 = vmatpush.bf16.msra.mxu3 %v1202_v23 }
  0xc3   : > { %609 = vmatmul.bf16.gmra.mxu0 %v505_v19 }
  0xf0   : > { %v585_v24 = vpop.f32.mrf.mxu0 }
  0xf1   : > { %v586_v27 = vadd.f32 %v1874_v25, %v585_v24  ;;  %v1201_v24 = vld [vmem:[#allocation10] sm:$0xff] }
  0xf2   : > { %865 = vmatpush.bf16.msra.mxu2 %v1201_v24  ;;  %1311 = vmatpush.bf16.msra.mxu3 %v1201_v24 }
  0xf3   : > { %v625_v30 = vmax.f32 %v586_v27, 0.0 }
  0xf6   : > { %v615_v26 = vpop.f32.mrf.mxu3 }
  0xf7   : > { %v616_v32 = vadd.f32 %v1874_v25, %v615_v26 }
  0xf8   : > { %v587_v28 = vpop.f32.mrf.mxu0 }
  0xf9   : > { %v588_v29 = vadd.f32 %v1874_v25, %v587_v28  ;;  %v637_v35 = vmax.f32 %v616_v32, 0.0 }
  0xfb   : > { %v626_v31 = vmax.f32 %v588_v29, 0.0 }
  0xfd   : > { %v641_v33 = vpack.c.bf16 %v626_v31, %v625_v30 }
  0xfe   : > { %v617_v34 = vpop.f32.mrf.mxu3 }
  0xff   : > { %725 = vmatmul.bf16.vlgmr.msra.gmra.mxu1 %v641_v33  ;;  %v618_v36 = vadd.f32 %v1874_v25, %v617_v34 }
 0x100   : > { %v590_v37 = vpop.f32.mrf.mxu0 }
 0x101   : > { %v638_v38 = vmax.f32 %v618_v36, 0.0  ;;  %v591_v41 = vadd.f32 %v1874_v25, %v590_v37 }
 0x103   : > { %v647_v39 = vpack.c.bf16 %v638_v38, %v637_v35  ;;  %v627_v44 = vmax.f32 %v591_v41, 0.0 }
 0x105   : > { %755 = vmatmul.bf16.vlgmr.msrb.gmra.mxu3 %v647_v39 }
 0x106   : > { %v620_v40 = vpop.f32.mrf.mxu3 }
 0x107   : > { %v621_v46 = vadd.f32 %v1874_v25, %v620_v40 }
 0x108   : > { %v592_v42 = vpop.f32.mrf.mxu0 }
 0x109   : > { %v593_v43 = vadd.f32 %v1874_v25, %v592_v42  ;;  %v639_v49 = vmax.f32 %v621_v46, 0.0 }
 0x10b   : > { %v628_v45 = vmax.f32 %v593_v43, 0.0 }
 0x10d   : > { %v642_v47 = vpack.c.bf16 %v628_v45, %v627_v44 }
 0x10e   : > { %v622_v48 = vpop.f32.mrf.mxu3 }
 0x10f   : > { %730 = vmatmul.bf16.gmra.mxu1 %v642_v47  ;;  %v623_v50 = vadd.f32 %v1874_v25, %v622_v48 }
 0x110   : > { %v595_v51 = vpop.f32.mrf.mxu0 }
 0x111   : > { %v640_v52 = vmax.f32 %v623_v50, 0.0  ;;  %v596_v54 = vadd.f32 %v1874_v25, %v595_v51 }
 0x113   : > { %v648_v53 = vpack.c.bf16 %v640_v52, %v639_v49  ;;  %v629_v57 = vmax.f32 %v596_v54, 0.0 }
 0x115   : > { %760 = vmatmul.bf16.gmra.mxu3 %v648_v53 }
 0x118   : > { %v597_v55 = vpop.f32.mrf.mxu0 }
 0x119   : > { %v598_v56 = vadd.f32 %v1874_v25, %v597_v55 }
 0x11b   : > { %v630_v58 = vmax.f32 %v598_v56, 0.0 }
 0x11d   : > { %v643_v59 = vpack.c.bf16 %v630_v58, %v629_v57 }
 0x11f   : > { %735 = vmatmul.bf16.gmra.mxu1 %v643_v59 }
 0x120   : > { %v600_v60 = vpop.f32.mrf.mxu0 }
 0x121   : > { %v601_v61 = vadd.f32 %v1874_v25, %v600_v60 }
 0x123   : > { %v631_v0 = vmax.f32 %v601_v61, 0.0 }
 0x128   : > { %v602_v62 = vpop.f32.mrf.mxu0 }
 0x129   : > { %v603_v63 = vadd.f32 %v1874_v25, %v602_v62 }
 0x12b   : > { %v632_v1 = vmax.f32 %v603_v63, 0.0 }
 0x12d   : > { %v644_v2 = vpack.c.bf16 %v632_v1, %v631_v0 }
 0x12f   : > { %740 = vmatmul.bf16.gmra.mxu1 %v644_v2 }
 0x130   : > { %v605_v4 = vpop.f32.mrf.mxu0 }
 0x131   : > { %v606_v7 = vadd.f32 %v1874_v25, %v605_v4 }
 0x133   : > { %v633_v11 = vmax.f32 %v606_v7, 0.0 }
 0x138   : > { %v607_v8 = vpop.f32.mrf.mxu0 }
 0x139   : > { %v608_v9 = vadd.f32 %v1874_v25, %v607_v8 }
 0x13b   : > { %v634_v12 = vmax.f32 %v608_v9, 0.0 }
 0x13d   : > { %v645_v13 = vpack.c.bf16 %v634_v12, %v633_v11 }
 0x13f   : > { %745 = vmatmul.bf16.gmra.mxu1 %v645_v13 }
 0x140   : > { %v610_v14 = vpop.f32.mrf.mxu0 }
 0x141   : > { %v611_v15 = vadd.f32 %v1874_v25, %v610_v14 }
 0x143   : > { %v635_v18 = vmax.f32 %v611_v15, 0.0 }
 0x148   : > { %v612_v16 = vpop.f32.mrf.mxu0 }
 0x149   : > { %v613_v17 = vadd.f32 %v1874_v25, %v612_v16  ;;  %v1399_v25 = vld [vmem:[%s1956_s5] ss:$0 sm:$0xff] }
 0x14b   : > { %v636_v19 = vmax.f32 %v613_v17, 0.0 }
 0x14d   : > { %v646_v20 = vpack.c.bf16 %v636_v19, %v635_v18  ;;  %v1400_v18 = vld [vmem:[%s1958_s7] ss:$0 sm:$0xff] }
 0x14f   : > { %750 = vmatmul.bf16.gmra.mxu1 %v646_v20 }
 0x17c   : > { %v726_v26 = vpop.f32.mrf.mxu1 }
 0x17d   : > { %v727_v27 = vadd.f32 %v1399_v25, %v726_v26 }
 0x17f   : > { %v766_v30 = vmax.f32 %v727_v27, 0.0 }
 0x184   : > { %v728_v28 = vpop.f32.mrf.mxu1 }
 0x185   : > { %v729_v29 = vadd.f32 %v1399_v25, %v728_v28 }
 0x187   : > { %v767_v31 = vmax.f32 %v729_v29, 0.0 }
 0x188   : > { %v756_v32 = vpop.f32.mrf.mxu3 }
 0x189   : > { %v782_v33 = vpack.c.bf16 %v767_v31, %v766_v30  ;;  %v757_v35 = vadd.f32 %v1399_v25, %v756_v32 }
 0x18b   : > { %866 = vmatmul.bf16.vlgmr.msra.gmra.mxu2 %v782_v33  ;;  %v778_v37 = vmax.f32 %v757_v35, 0.0 }
 0x18c   : > { %v731_v34 = vpop.f32.mrf.mxu1 }
 0x18d   : > { %v732_v39 = vadd.f32 %v1399_v25, %v731_v34 }
 0x18f   : > { %v768_v44 = vmax.f32 %v732_v39, 0.0 }
 0x190   : > { %v758_v36 = vpop.f32.mrf.mxu3 }
 0x191   : > { %v759_v38 = vadd.f32 %v1399_v25, %v758_v36 }
 0x193   : > { %v779_v40 = vmax.f32 %v759_v38, 0.0 }
 0x194   : > { %v733_v41 = vpop.f32.mrf.mxu1 }
 0x195   : > { %v734_v42 = vadd.f32 %v1399_v25, %v733_v41  ;;  %v788_v43 = vpack.c.bf16 %v779_v40, %v778_v37 }
 0x197   : > { %v769_v45 = vmax.f32 %v734_v42, 0.0  ;;  %896 = vmatmul.bf16.vlgmr.msra.gmra.mxu3 %v788_v43 }
 0x198   : > { %v761_v46 = vpop.f32.mrf.mxu3 }
 0x199   : > { %v783_v47 = vpack.c.bf16 %v769_v45, %v768_v44  ;;  %v762_v49 = vadd.f32 %v1399_v25, %v761_v46 }
 0x19b   : > { %871 = vmatmul.bf16.gmra.mxu2 %v783_v47  ;;  %v780_v51 = vmax.f32 %v762_v49, 0.0 }
 0x19c   : > { %v736_v48 = vpop.f32.mrf.mxu1 }
 0x19d   : > { %v737_v53 = vadd.f32 %v1399_v25, %v736_v48 }
 0x19f   : > { %v770_v58 = vmax.f32 %v737_v53, 0.0 }
 0x1a0   : > { %v763_v50 = vpop.f32.mrf.mxu3 }
 0x1a1   : > { %v764_v52 = vadd.f32 %v1399_v25, %v763_v50 }
 0x1a3   : > { %v781_v54 = vmax.f32 %v764_v52, 0.0 }
 0x1a4   : > { %v738_v55 = vpop.f32.mrf.mxu1 }
 0x1a5   : > { %v739_v56 = vadd.f32 %v1399_v25, %v738_v55  ;;  %v789_v57 = vpack.c.bf16 %v781_v54, %v780_v51 }
 0x1a7   : > { %v771_v59 = vmax.f32 %v739_v56, 0.0  ;;  %901 = vmatmul.bf16.gmra.mxu3 %v789_v57 }
 0x1a9   : > { %v784_v60 = vpack.c.bf16 %v771_v59, %v770_v58 }
 0x1ab   : > { %876 = vmatmul.bf16.gmra.mxu2 %v784_v60 }
 0x1ac   : > { %v741_v61 = vpop.f32.mrf.mxu1 }
 0x1ad   : > { %v742_v62 = vadd.f32 %v1399_v25, %v741_v61 }
 0x1af   : > { %v772_v1 = vmax.f32 %v742_v62, 0.0 }
 0x1b4   : > { %v743_v63 = vpop.f32.mrf.mxu1 }
 0x1b5   : > { %v744_v0 = vadd.f32 %v1399_v25, %v743_v63 }
 0x1b7   : > { %v773_v2 = vmax.f32 %v744_v0, 0.0 }
 0x1b9   : > { %v785_v3 = vpack.c.bf16 %v773_v2, %v772_v1 }
 0x1bb   : > { %881 = vmatmul.bf16.gmra.mxu2 %v785_v3 }
 0x1bc   : > { %v746_v4 = vpop.f32.mrf.mxu1 }
 0x1bd   : > { %v747_v5 = vadd.f32 %v1399_v25, %v746_v4 }
 0x1bf   : > { %v774_v8 = vmax.f32 %v747_v5, 0.0 }
 0x1c4   : > { %v748_v6 = vpop.f32.mrf.mxu1 }
 0x1c5   : > { %v749_v7 = vadd.f32 %v1399_v25, %v748_v6 }
 0x1c7   : > { %v775_v9 = vmax.f32 %v749_v7, 0.0 }
 0x1c9   : > { %v786_v10 = vpack.c.bf16 %v775_v9, %v774_v8 }
 0x1cb   : > { %886 = vmatmul.bf16.gmra.mxu2 %v786_v10 }
 0x1cc   : > { %v751_v11 = vpop.f32.mrf.mxu1 }
 0x1cd   : > { %v752_v12 = vadd.f32 %v1399_v25, %v751_v11 }
 0x1cf   : > { %v776_v15 = vmax.f32 %v752_v12, 0.0 }
 0x1d4   : > { %v753_v13 = vpop.f32.mrf.mxu1 }
 0x1d5   : > { %v754_v14 = vadd.f32 %v1399_v25, %v753_v13 }
 0x1d7   : > { %v777_v16 = vmax.f32 %v754_v14, 0.0 }
 0x1d9   : > { %v787_v17 = vpack.c.bf16 %v777_v16, %v776_v15 }
 0x1db   : > { %891 = vmatmul.bf16.gmra.mxu2 %v787_v17 }
 0x20e   : > { %v867_v19 = vpop.f32.mrf.mxu2 }
 0x20f   : > { %v868_v20 = vadd.f32 %v1400_v18, %v867_v19 }
 0x211   : > { %907 = vst [vmem:[%s1899_s15] sm:$0xff] %v868_v20 }
 0x216   : > { %v869_v21 = vpop.f32.mrf.mxu2 }
 0x217   : > { %v870_v22 = vadd.f32 %v1400_v18, %v869_v21 }
 0x219   : > { %908 = vst [vmem:[%s1899_s15 + $0x8] sm:$0xff] %v870_v22 }
 0x21a   : > { %v897_v23 = vpop.f32.mrf.mxu3 }
 0x21b   : > { %v898_v24 = vadd.f32 %v1400_v18, %v897_v23 }
 0x21d   : > { %919 = vst [vmem:[%s1899_s15 + $0x60] sm:$0xff] %v898_v24 }
 0x21e   : > { %v872_v26 = vpop.f32.mrf.mxu2 }
 0x21f   : > { %v873_v25 = vadd.f32 %v1400_v18, %v872_v26 }
 0x221   : > { %909 = vst [vmem:[%s1899_s15 + $0x10] sm:$0xff] %v873_v25 }
 0x222   : > { %v899_v27 = vpop.f32.mrf.mxu3 }
 0x223   : > { %v900_v28 = vadd.f32 %v1400_v18, %v899_v27 }
 0x225   : > { %920 = vst [vmem:[%s1899_s15 + $0x68] sm:$0xff] %v900_v28 }
 0x226   : > { %v874_v29 = vpop.f32.mrf.mxu2 }
 0x227   : > { %v875_v30 = vadd.f32 %v1400_v18, %v874_v29 }
 0x229   : > { %910 = vst [vmem:[%s1899_s15 + $0x18] sm:$0xff] %v875_v30 }
 0x22a   : > { %v902_v31 = vpop.f32.mrf.mxu3 }
 0x22b   : > { %v903_v32 = vadd.f32 %v1400_v18, %v902_v31 }
 0x22d   : > { %921 = vst [vmem:[%s1899_s15 + $0x70] sm:$0xff] %v903_v32 }
 0x22e   : > { %v877_v33 = vpop.f32.mrf.mxu2 }
 0x22f   : > { %v878_v34 = vadd.f32 %v1400_v18, %v877_v33 }
 0x231   : > { %911 = vst [vmem:[%s1899_s15 + $0x20] sm:$0xff] %v878_v34 }
 0x232   : > { %v904_v35 = vpop.f32.mrf.mxu3 }
 0x233   : > { %v905_v36 = vadd.f32 %v1400_v18, %v904_v35 }
 0x235   : > { %922 = vst [vmem:[%s1899_s15 + $0x78] sm:$0xff] %v905_v36 }
 0x236   : > { %v879_v37 = vpop.f32.mrf.mxu2 }
 0x237   : > { %v880_v38 = vadd.f32 %v1400_v18, %v879_v37 }
 0x239   : > { %912 = vst [vmem:[%s1899_s15 + $0x28] sm:$0xff] %v880_v38 }
 0x23e   : > { %v882_v39 = vpop.f32.mrf.mxu2 }
 0x23f   : > { %v883_v40 = vadd.f32 %v1400_v18, %v882_v39 }
 0x241   : > { %913 = vst [vmem:[%s1899_s15 + $0x30] sm:$0xff] %v883_v40 }
 0x246   : > { %v884_v41 = vpop.f32.mrf.mxu2 }
 0x247   : > { %v885_v42 = vadd.f32 %v1400_v18, %v884_v41 }
 0x249   : > { %914 = vst [vmem:[%s1899_s15 + $0x38] sm:$0xff] %v885_v42 }
 0x24e   : > { %v887_v43 = vpop.f32.mrf.mxu2 }
 0x24f   : > { %v888_v44 = vadd.f32 %v1400_v18, %v887_v43 }
 0x251   : > { %915 = vst [vmem:[%s1899_s15 + $0x40] sm:$0xff] %v888_v44 }
 0x256   : > { %v889_v45 = vpop.f32.mrf.mxu2 }
 0x257   : > { %v890_v46 = vadd.f32 %v1400_v18, %v889_v45 }
 0x259   : > { %916 = vst [vmem:[%s1899_s15 + $0x48] sm:$0xff] %v890_v46 }
 0x25e   : > { %v892_v47 = vpop.f32.mrf.mxu2 }
 0x25f   : > { %v893_v48 = vadd.f32 %v1400_v18, %v892_v47 }
 0x261   : > { %917 = vst [vmem:[%s1899_s15 + $0x50] sm:$0xff] %v893_v48 }
 0x266   : > { %v894_v49 = vpop.f32.mrf.mxu2 }
 0x267   : > { %v895_v50 = vadd.f32 %v1400_v18, %v894_v49 }
 0x269   : > { %918 = vst [vmem:[%s1899_s15 + $0x58] sm:$0xff] %v895_v50 }
 0x26a   : > { %1578 = shalt.err (!%p1575_p11)
}
 0x26b   : > { %s1636_s23 = smov 128   ;;  %s1637_s6 = smov 8  }
 0x26c   : > { %1328 = dma.vmem_to_hbm [thread:$0]  (%p1775_p7), %s937_s0, 2048, %s939_s17, %s924_s14, %s1636_s23, %s1636_s23, %s1637_s6  }
 0x26d PF: > { %s953_s29 = sand.u32 1, %s1617_s27   ;;  %p1983_p12 = scmp.ge.s32.totalorder %s1629_s30, 2 }
 0x26e   : > { %s954_s19 = scalar_lea.sflag [#allocation4], %s953_s29 }
 0x26f   : > { %p1348_p13 = pnand %p1983_p12, %p1718_p6 }
 0x271   : > { %p1349_p0 = pneg %p1348_p13 }
 0x273   : > { %1612 = dma.done.wait (%p1349_p0), %s954_s19, 2048  }
 0x274   : > { %1614 = vsyncadd (%p1349_p0), %s954_s19, 4294965248  ;;  %s1984_s2 = sld [smem:[#allocation17_spill]]  ;;  %p25_p3 = scmp.ge.s32.totalorder %s1756_s18, 4  }
 0x275   : > { %s1985_s29 = sld [smem:[#allocation18_spill]]  ;;  %s1986_s27 = smov %s1621_s28 }
 0x276   : > { %s1988_s30 = smov %s1756_s18  ;;  %27 = sbr.rel (!%p25_p3) target bundleno = 13 (0xd), region = 122 }
 0x27a   : > { %s1987_s28 = smov %s1984_s2 }
 0x27b   :  { %960 = vsyncpa [#allocation3], 1 }
 0x27c   :  { %962 = vsyncpa [#allocation3 + $0x1], 1 }
 0x27d   :  { %963 = vsyncpa [#allocation6], 1 }
 0x27e   :  { %965 = vsyncpa [#allocation6 + $0x1], 1 }
 0x27f   :  { %966 = vsyncpa [#allocation9], 1 }
 0x280   :  { %967 = vsyncpa [#allocation4], 1 }
 0x281   :  { %969 = vsyncpa [#allocation4 + $0x1], 1 }

</bundles_post_ra>
